<compile_context>
chip_gen: v5e
topology: v5e:2x2
jax: 0.10.0
libtpu: 0.0.40
codegen_flags: <defaults>
</compile_context>

<pallas_src>
import jax
import jax.numpy as jnp
from jax import lax
from jax.experimental import pallas as pl
from jax.experimental.pallas import tpu as pltpu

_EPS = 1e-5
_KH = _KW = 3  # module spec: kernel_size=3, stride=1, padding=1


def _vmem_budget_bytes():
    """Generation-aware VMEM budget (75% of physical, headroom for Mosaic)."""
    cap = 128 * 1024 * 1024          # v5e/v6e fallback
    try:
        cap = int(pltpu.get_tpu_info().vmem_capacity_bytes)
    except Exception:
        pass
    return int(cap * 3 // 4)


def _pick_batch_tile(n, per_item_bytes, budget_bytes, max_tile=None):
    """Largest divisor of n whose per-step working set fits the VMEM budget.

    Capped at n//2 (when n >= 2) so the grid keeps >= 2 steps and v7x's two
    TensorCores both get work; optional max_tile bounds kernel unrolling.
    """
    cap = n if n < 2 else max(1, n // 2)
    if max_tile is not None:
        cap = min(cap, max_tile)
    best = 1
    for bt in range(1, cap + 1):
        if n % bt == 0 and bt * per_item_bytes <= budget_bytes:
            best = bt
    return best


def _conv_stats_kernel(x_ref, w_ref, y_ref, stats_ref):
    """3x3 conv as 9 accumulating MXU dots + lane-dense partial BN stats.

    x_ref    : (Bt, Cin, H+2, W+2)  zero-padded input images
    w_ref    : (9, Cout, Cin)       per-tap conv weights (resident)
    y_ref    : (Bt, Cout, H*W)      conv output (pre-BN), lane-dense
    stats_ref: (1, 2, Cout)         row 0 = channel sums, row 1 = sums of squares
    """
    bt, cin, hp, wp = x_ref.shape
    h, w = hp - (_KH - 1), wp - (_KW - 1)
    hw = h * w
    cout = w_ref.shape[1]

    st = jnp.zeros((2, cout), jnp.float32)
    for b in range(bt):                        # static unroll (small, capped)
        xb = x_ref[b]                          # (Cin, H+2, W+2)
        acc = jnp.zeros((cout, hw), jnp.float32)
        for kh in range(_KH):                  # 9 accumulating MXU dots;
            for kw in range(_KW):              # no im2col temp is materialized
                patch = xb[:, kh:kh + h, kw:kw + w].reshape(cin, hw)
                acc = acc + jnp.dot(w_ref[kh * _KW + kw], patch,
                                    preferred_element_type=jnp.float32)
        y_ref[b] = acc.astype(y_ref.dtype)
        st = st + jnp.concatenate(
            [jnp.sum(acc, axis=1).reshape(1, cout),
             jnp.sum(acc * acc, axis=1).reshape(1, cout)], axis=0)
    stats_ref[0] = st


def _bn_apply_kernel(y_ref, scale_ref, shift_ref, o_ref):
    """Per-channel affine normalization, lane-dense: (Bt,Cout,HW)*(Cout,1)+(Cout,1)."""
    o_ref[...] = y_ref[...] * scale_ref[...] + shift_ref[...]


def normed_conv(x_nchw, weight_oihw, gamma, beta):
    """x: (N, Cin, H, W); weight: (Cout, Cin, 3, 3). Returns (N, Cout, H, W)."""
    n, cin, h, w = x_nchw.shape
    cout = weight_oihw.shape[0]
    hw = h * w
    hp, wp = h + _KH - 1, w + _KW - 1

    budget = _vmem_budget_bytes()

    # Wrapper glue: 1-pixel zero halo (stays in NCHW; no transposes anywhere).
    x_pad = jnp.pad(x_nchw.astype(jnp.float32),
                    ((0, 0), (0, 0), (1, 1), (1, 1)))
    # Per-tap weights: (Cout, Cin, 3, 3) -> (9, Cout, Cin), tap index = kh*3+kw.
    w_f = jnp.transpose(weight_oihw.astype(jnp.float32),
                        (2, 3, 0, 1)).reshape(_KH * _KW, cout, cin)

    cparams = pltpu.CompilerParams(
        dimension_semantics=("parallel",),
        vmem_limit_bytes=budget,
    )

    # ---- Pass 1: conv + per-tile BN partial sums, batch-tiled & pipelined ----
    fixed1 = 4 * (2 * _KH * _KW * cout * cin + 2 * 2 * cout)   # weights + stats
    per_img1 = 4 * (2 * cin * hp * wp          # x block, double-buffered
                    + 2 * cout * hw            # y block, double-buffered
                    + (cin + cout) * hw)       # in-kernel tap slice + acc temps
    bt1 = _pick_batch_tile(n, per_img1, max(budget - fixed1, per_img1),
                           max_tile=8)         # bound the static unroll
    g1 = n // bt1

    y_flat, stats = pl.pallas_call(
        _conv_stats_kernel,
        out_shape=(
            jax.ShapeDtypeStruct((n, cout, hw), jnp.float32),
            jax.ShapeDtypeStruct((g1, 2, cout), jnp.float32),
        ),
        grid=(g1,),
        in_specs=[
            pl.BlockSpec((bt1, cin, hp, wp), lambda i: (i, 0, 0, 0)),
            # Resident weights (constant index map).  pl.Buffered(1) would drop
            # the second buffer; left at default for lowering portability.
            pl.BlockSpec((_KH * _KW, cout, cin), lambda i: (0, 0, 0)),
        ],
        out_specs=(
            pl.BlockSpec((bt1, cout, hw), lambda i: (i, 0, 0)),
            pl.BlockSpec((1, 2, cout), lambda i: (i, 0, 0)),
        ),
        compiler_params=cparams,
    )(x_pad, w_f)

    # ---- Global training-mode BatchNorm statistics (tiny (Cout,)-sized math) ----
    count = float(n * hw)
    mean = jnp.sum(stats[:, 0, :], axis=0) / count
    ex2 = jnp.sum(stats[:, 1, :], axis=0) / count
    # TODO(synk): E[x^2]-E[x]^2 can lose f32 precision when |mean| >> std at large
    # scale; a centered second reduction over y_flat would be exact if needed.
    var = jnp.maximum(ex2 - mean * mean, 0.0)
    inv = lax.rsqrt(var + _EPS)
    g = gamma.astype(jnp.float32)
    b = beta.astype(jnp.float32)
    scale = (g * inv).reshape(cout, 1)
    shift = (b - mean * g * inv).reshape(cout, 1)

    # ---- Pass 2: in-place affine normalize (mem-bound, batch-tiled) ----
    per_img2 = 4 * 4 * cout * hw               # y in + out, double-buffered
    bt2 = _pick_batch_tile(n, per_img2, budget)
    g2 = n // bt2

    out_flat = pl.pallas_call(
        _bn_apply_kernel,
        out_shape=jax.ShapeDtypeStruct((n, cout, hw), jnp.float32),
        grid=(g2,),
        in_specs=[
            pl.BlockSpec((bt2, cout, hw), lambda i: (i, 0, 0)),
            pl.BlockSpec((cout, 1), lambda i: (0, 0)),
            pl.BlockSpec((cout, 1), lambda i: (0, 0)),
        ],
        out_specs=pl.BlockSpec((bt2, cout, hw), lambda i: (i, 0, 0)),
        compiler_params=cparams,
        input_output_aliases={0: 0},           # normalize y_flat in place
    )(y_flat, scale, shift)

    # Output is already flattened NCHW -> reshape only (no transpose).
    return out_flat.reshape(n, cout, h, w)


def _reference(x_nchw, weight_oihw, gamma, beta):
    y = lax.conv_general_dilated(
        x_nchw, weight_oihw, window_strides=(1, 1), padding=((1, 1), (1, 1)),
        dimension_numbers=("NCHW", "OIHW", "NCHW"))
    mean = jnp.mean(y, axis=(0, 2, 3), keepdims=True)
    var = jnp.mean((y - mean) ** 2, axis=(0, 2, 3), keepdims=True)
    g = gamma.reshape(1, -1, 1, 1)
    b = beta.reshape(1, -1, 1, 1)
    return (y - mean) * lax.rsqrt(var + _EPS) * g + b


if __name__ == "__main__":
    key = jax.random.PRNGKey(0)
    k_x, k_w, k_g, k_b = jax.random.split(key, 4)

    N, Cin, Cout, H, W = 2, 4, 8, 16, 16
    KH = KW = 3

    x = jax.random.normal(k_x, (N, Cin, H, W), dtype=jnp.float32)
    # Deterministic synthetic params (shapes from nn.Conv2d / nn.BatchNorm2d).
    weight = jax.random.normal(k_w, (Cout, Cin, KH, KW), dtype=jnp.float32) * 0.1
    gamma = 1.0 + 0.1 * jax.random.normal(k_g, (Cout,), dtype=jnp.float32)
    beta = 0.1 * jax.random.normal(k_b, (Cout,), dtype=jnp.float32)

    fn = jax.jit(normed_conv)
    out = jax.block_until_ready(fn(x, weight, gamma, beta))
    ref = jax.block_until_ready(_reference(x, weight, gamma, beta))

    assert out.shape == (N, Cout, H, W)
    err = float(jnp.max(jnp.abs(out - ref)))
    assert err < 2e-3, f"mismatch vs reference: max abs err = {err}"

    print("KERNEL_OK")
</pallas_src>

<mosaic_0001>
module attributes {stable_mosaic.version = 11 : i64} {
  func.func @_conv_stats_kernel(%arg0: i32, %arg1: memref<1x4x18x18xf32, #tpu.memory_space<vmem>>, %arg2: memref<9x8x4xf32, #tpu.memory_space<vmem>>, %arg3: memref<1x8x256xf32, #tpu.memory_space<vmem>>, %arg4: memref<1x2x8xf32, #tpu.memory_space<vmem>>) attributes {dimension_semantics = [#tpu.dimension_semantics<parallel>], iteration_bounds = array<i64: 2>, scalar_prefetch = 0 : i64, scratch_operands = 0 : i64, tpu.core_type = #tpu.core_type<tc>, window_params = [{transform_indices = @transform_0, window_bounds = array<i64: 1, 4, 18, 18>}, {pipeline_mode = #tpu.pipeline_mode<synchronous>, transform_indices = @transform_1, window_bounds = array<i64: 9, 8, 4>}, {transform_indices = @transform_2, window_bounds = array<i64: 1, 8, 256>}, {transform_indices = @transform_3, window_bounds = array<i64: 1, 2, 8>}]} {
    %cst = arith.constant 0.000000e+00 : f32
    %0 = vector.broadcast %cst : f32 to vector<2x8xf32>
    %c0 = arith.constant 0 : index
    %c0_0 = arith.constant 0 : index
    %c0_1 = arith.constant 0 : index
    %c0_2 = arith.constant 0 : index
    %1 = vector.load %arg1[%c0, %c0_0, %c0_1, %c0_2] : memref<1x4x18x18xf32, #tpu.memory_space<vmem>>, vector<1x4x18x18xf32>
    %2 = vector.shape_cast %1 : vector<1x4x18x18xf32> to vector<4x18x18xf32>
    %cst_3 = arith.constant 0.000000e+00 : f32
    %3 = vector.broadcast %cst_3 : f32 to vector<8x256xf32>
    %4 = vector.extract_strided_slice %2 {offsets = [0, 0, 0], sizes = [4, 16, 16], strides = [1, 1, 1]} : vector<4x18x18xf32> to vector<4x16x16xf32>
    %5 = vector.shape_cast %4 : vector<4x16x16xf32> to vector<4x256xf32>
    %c0_4 = arith.constant 0 : index
    %c0_5 = arith.constant 0 : index
    %c0_6 = arith.constant 0 : index
    %6 = vector.load %arg2[%c0_4, %c0_5, %c0_6] : memref<9x8x4xf32, #tpu.memory_space<vmem>>, vector<1x8x4xf32>
    %7 = vector.shape_cast %6 : vector<1x8x4xf32> to vector<8x4xf32>
    %cst_7 = arith.constant dense<0.000000e+00> : vector<8x256xf32>
    %8 = tpu.matmul %7, %5, %cst_7 {dimension_numbers = #tpu.dot_dimension_numbers<[1], [0], [0], [1], [0, 0, 1, 1], [], []>} : vector<8x4xf32>, vector<4x256xf32>, vector<8x256xf32> -> vector<8x256xf32>
    %9 = arith.addf %3, %8 : vector<8x256xf32>
    %10 = vector.extract_strided_slice %2 {offsets = [0, 0, 1], sizes = [4, 16, 16], strides = [1, 1, 1]} : vector<4x18x18xf32> to vector<4x16x16xf32>
    %11 = vector.shape_cast %10 : vector<4x16x16xf32> to vector<4x256xf32>
    %c1 = arith.constant 1 : index
    %c0_8 = arith.constant 0 : index
    %c0_9 = arith.constant 0 : index
    %12 = vector.load %arg2[%c1, %c0_8, %c0_9] : memref<9x8x4xf32, #tpu.memory_space<vmem>>, vector<1x8x4xf32>
    %13 = vector.shape_cast %12 : vector<1x8x4xf32> to vector<8x4xf32>
    %cst_10 = arith.constant dense<0.000000e+00> : vector<8x256xf32>
    %14 = tpu.matmul %13, %11, %cst_10 {dimension_numbers = #tpu.dot_dimension_numbers<[1], [0], [0], [1], [0, 0, 1, 1], [], []>} : vector<8x4xf32>, vector<4x256xf32>, vector<8x256xf32> -> vector<8x256xf32>
    %15 = arith.addf %9, %14 : vector<8x256xf32>
    %16 = vector.extract_strided_slice %2 {offsets = [0, 0, 2], sizes = [4, 16, 16], strides = [1, 1, 1]} : vector<4x18x18xf32> to vector<4x16x16xf32>
    %17 = vector.shape_cast %16 : vector<4x16x16xf32> to vector<4x256xf32>
    %c2 = arith.constant 2 : index
    %c0_11 = arith.constant 0 : index
    %c0_12 = arith.constant 0 : index
    %18 = vector.load %arg2[%c2, %c0_11, %c0_12] : memref<9x8x4xf32, #tpu.memory_space<vmem>>, vector<1x8x4xf32>
    %19 = vector.shape_cast %18 : vector<1x8x4xf32> to vector<8x4xf32>
    %cst_13 = arith.constant dense<0.000000e+00> : vector<8x256xf32>
    %20 = tpu.matmul %19, %17, %cst_13 {dimension_numbers = #tpu.dot_dimension_numbers<[1], [0], [0], [1], [0, 0, 1, 1], [], []>} : vector<8x4xf32>, vector<4x256xf32>, vector<8x256xf32> -> vector<8x256xf32>
    %21 = arith.addf %15, %20 : vector<8x256xf32>
    %22 = vector.extract_strided_slice %2 {offsets = [0, 1, 0], sizes = [4, 16, 16], strides = [1, 1, 1]} : vector<4x18x18xf32> to vector<4x16x16xf32>
    %23 = vector.shape_cast %22 : vector<4x16x16xf32> to vector<4x256xf32>
    %c3 = arith.constant 3 : index
    %c0_14 = arith.constant 0 : index
    %c0_15 = arith.constant 0 : index
    %24 = vector.load %arg2[%c3, %c0_14, %c0_15] : memref<9x8x4xf32, #tpu.memory_space<vmem>>, vector<1x8x4xf32>
    %25 = vector.shape_cast %24 : vector<1x8x4xf32> to vector<8x4xf32>
    %cst_16 = arith.constant dense<0.000000e+00> : vector<8x256xf32>
    %26 = tpu.matmul %25, %23, %cst_16 {dimension_numbers = #tpu.dot_dimension_numbers<[1], [0], [0], [1], [0, 0, 1, 1], [], []>} : vector<8x4xf32>, vector<4x256xf32>, vector<8x256xf32> -> vector<8x256xf32>
    %27 = arith.addf %21, %26 : vector<8x256xf32>
    %28 = vector.extract_strided_slice %2 {offsets = [0, 1, 1], sizes = [4, 16, 16], strides = [1, 1, 1]} : vector<4x18x18xf32> to vector<4x16x16xf32>
    %29 = vector.shape_cast %28 : vector<4x16x16xf32> to vector<4x256xf32>
    %c4 = arith.constant 4 : index
    %c0_17 = arith.constant 0 : index
    %c0_18 = arith.constant 0 : index
    %30 = vector.load %arg2[%c4, %c0_17, %c0_18] : memref<9x8x4xf32, #tpu.memory_space<vmem>>, vector<1x8x4xf32>
    %31 = vector.shape_cast %30 : vector<1x8x4xf32> to vector<8x4xf32>
    %cst_19 = arith.constant dense<0.000000e+00> : vector<8x256xf32>
    %32 = tpu.matmul %31, %29, %cst_19 {dimension_numbers = #tpu.dot_dimension_numbers<[1], [0], [0], [1], [0, 0, 1, 1], [], []>} : vector<8x4xf32>, vector<4x256xf32>, vector<8x256xf32> -> vector<8x256xf32>
    %33 = arith.addf %27, %32 : vector<8x256xf32>
    %34 = vector.extract_strided_slice %2 {offsets = [0, 1, 2], sizes = [4, 16, 16], strides = [1, 1, 1]} : vector<4x18x18xf32> to vector<4x16x16xf32>
    %35 = vector.shape_cast %34 : vector<4x16x16xf32> to vector<4x256xf32>
    %c5 = arith.constant 5 : index
    %c0_20 = arith.constant 0 : index
    %c0_21 = arith.constant 0 : index
    %36 = vector.load %arg2[%c5, %c0_20, %c0_21] : memref<9x8x4xf32, #tpu.memory_space<vmem>>, vector<1x8x4xf32>
    %37 = vector.shape_cast %36 : vector<1x8x4xf32> to vector<8x4xf32>
    %cst_22 = arith.constant dense<0.000000e+00> : vector<8x256xf32>
    %38 = tpu.matmul %37, %35, %cst_22 {dimension_numbers = #tpu.dot_dimension_numbers<[1], [0], [0], [1], [0, 0, 1, 1], [], []>} : vector<8x4xf32>, vector<4x256xf32>, vector<8x256xf32> -> vector<8x256xf32>
    %39 = arith.addf %33, %38 : vector<8x256xf32>
    %40 = vector.extract_strided_slice %2 {offsets = [0, 2, 0], sizes = [4, 16, 16], strides = [1, 1, 1]} : vector<4x18x18xf32> to vector<4x16x16xf32>
    %41 = vector.shape_cast %40 : vector<4x16x16xf32> to vector<4x256xf32>
    %c6 = arith.constant 6 : index
    %c0_23 = arith.constant 0 : index
    %c0_24 = arith.constant 0 : index
    %42 = vector.load %arg2[%c6, %c0_23, %c0_24] : memref<9x8x4xf32, #tpu.memory_space<vmem>>, vector<1x8x4xf32>
    %43 = vector.shape_cast %42 : vector<1x8x4xf32> to vector<8x4xf32>
    %cst_25 = arith.constant dense<0.000000e+00> : vector<8x256xf32>
    %44 = tpu.matmul %43, %41, %cst_25 {dimension_numbers = #tpu.dot_dimension_numbers<[1], [0], [0], [1], [0, 0, 1, 1], [], []>} : vector<8x4xf32>, vector<4x256xf32>, vector<8x256xf32> -> vector<8x256xf32>
    %45 = arith.addf %39, %44 : vector<8x256xf32>
    %46 = vector.extract_strided_slice %2 {offsets = [0, 2, 1], sizes = [4, 16, 16], strides = [1, 1, 1]} : vector<4x18x18xf32> to vector<4x16x16xf32>
    %47 = vector.shape_cast %46 : vector<4x16x16xf32> to vector<4x256xf32>
    %c7 = arith.constant 7 : index
    %c0_26 = arith.constant 0 : index
    %c0_27 = arith.constant 0 : index
    %48 = vector.load %arg2[%c7, %c0_26, %c0_27] : memref<9x8x4xf32, #tpu.memory_space<vmem>>, vector<1x8x4xf32>
    %49 = vector.shape_cast %48 : vector<1x8x4xf32> to vector<8x4xf32>
    %cst_28 = arith.constant dense<0.000000e+00> : vector<8x256xf32>
    %50 = tpu.matmul %49, %47, %cst_28 {dimension_numbers = #tpu.dot_dimension_numbers<[1], [0], [0], [1], [0, 0, 1, 1], [], []>} : vector<8x4xf32>, vector<4x256xf32>, vector<8x256xf32> -> vector<8x256xf32>
    %51 = arith.addf %45, %50 : vector<8x256xf32>
    %52 = vector.extract_strided_slice %2 {offsets = [0, 2, 2], sizes = [4, 16, 16], strides = [1, 1, 1]} : vector<4x18x18xf32> to vector<4x16x16xf32>
    %53 = vector.shape_cast %52 : vector<4x16x16xf32> to vector<4x256xf32>
    %c8 = arith.constant 8 : index
    %c0_29 = arith.constant 0 : index
    %c0_30 = arith.constant 0 : index
    %54 = vector.load %arg2[%c8, %c0_29, %c0_30] : memref<9x8x4xf32, #tpu.memory_space<vmem>>, vector<1x8x4xf32>
    %55 = vector.shape_cast %54 : vector<1x8x4xf32> to vector<8x4xf32>
    %cst_31 = arith.constant dense<0.000000e+00> : vector<8x256xf32>
    %56 = tpu.matmul %55, %53, %cst_31 {dimension_numbers = #tpu.dot_dimension_numbers<[1], [0], [0], [1], [0, 0, 1, 1], [], []>} : vector<8x4xf32>, vector<4x256xf32>, vector<8x256xf32> -> vector<8x256xf32>
    %57 = arith.addf %51, %56 : vector<8x256xf32>
    %c0_32 = arith.constant 0 : index
    %c0_33 = arith.constant 0 : index
    %c0_34 = arith.constant 0 : index
    %58 = vector.load %arg3[%c0_32, %c0_33, %c0_34] : memref<1x8x256xf32, #tpu.memory_space<vmem>>, vector<1x8x256xf32>
    %59 = vector.shape_cast %58 : vector<1x8x256xf32> to vector<8x256xf32>
    %60 = vector.shape_cast %57 : vector<8x256xf32> to vector<1x8x256xf32>
    tpu.vector_store %arg3[%c0_32, %c0_33, %c0_34], %60 {strides = array<i32>} : memref<1x8x256xf32, #tpu.memory_space<vmem>>, vector<1x8x256xf32>,
    %cst_35 = arith.constant dense<0.000000e+00> : vector<8xf32>
    %61 = vector.multi_reduction <add>, %57, %cst_35 [1] : vector<8x256xf32> to vector<8xf32>
    %62 = vector.shape_cast %61 : vector<8xf32> to vector<1x8xf32>
    %63 = arith.mulf %57, %57 : vector<8x256xf32>
    %cst_36 = arith.constant dense<0.000000e+00> : vector<8xf32>
    %64 = vector.multi_reduction <add>, %63, %cst_36 [1] : vector<8x256xf32> to vector<8xf32>
    %65 = vector.shape_cast %64 : vector<8xf32> to vector<1x8xf32>
    %66 = tpu.concatenate %62, %65 in 0 : vector<1x8xf32>, vector<1x8xf32> -> vector<2x8xf32>
    %67 = arith.addf %0, %66 : vector<2x8xf32>
    %c0_37 = arith.constant 0 : index
    %c0_38 = arith.constant 0 : index
    %c0_39 = arith.constant 0 : index
    %68 = vector.load %arg4[%c0_37, %c0_38, %c0_39] : memref<1x2x8xf32, #tpu.memory_space<vmem>>, vector<1x2x8xf32>
    %69 = vector.shape_cast %68 : vector<1x2x8xf32> to vector<2x8xf32>
    %70 = vector.shape_cast %67 : vector<2x8xf32> to vector<1x2x8xf32>
    tpu.vector_store %arg4[%c0_37, %c0_38, %c0_39], %70 {strides = array<i32>} : memref<1x2x8xf32, #tpu.memory_space<vmem>>, vector<1x2x8xf32>,
    return
  }
  func.func @transform_0(%arg0: i32) -> (i32, i32, i32, i32) {
    %c0_i32 = arith.constant 0 : i32
    %c0_i32_0 = arith.constant 0 : i32
    %c0_i32_1 = arith.constant 0 : i32
    %c0_i32_2 = arith.constant 0 : i32
    return %arg0, %c0_i32, %c0_i32_0, %c0_i32_1 : i32, i32, i32, i32
  }
  func.func @transform_1(%arg0: i32) -> (i32, i32, i32) {
    %c0_i32 = arith.constant 0 : i32
    %c0_i32_0 = arith.constant 0 : i32
    %c0_i32_1 = arith.constant 0 : i32
    %c0_i32_2 = arith.constant 0 : i32
    return %c0_i32, %c0_i32_0, %c0_i32_1 : i32, i32, i32
  }
  func.func @transform_2(%arg0: i32) -> (i32, i32, i32) {
    %c0_i32 = arith.constant 0 : i32
    %c0_i32_0 = arith.constant 0 : i32
    %c0_i32_1 = arith.constant 0 : i32
    return %arg0, %c0_i32, %c0_i32_0 : i32, i32, i32
  }
  func.func @transform_3(%arg0: i32) -> (i32, i32, i32) {
    %c0_i32 = arith.constant 0 : i32
    %c0_i32_0 = arith.constant 0 : i32
    %c0_i32_1 = arith.constant 0 : i32
    return %arg0, %c0_i32, %c0_i32_0 : i32, i32, i32
  }
}

module attributes {stable_mosaic.version = 11 : i64} {
  func.func @_bn_apply_kernel(%arg0: i32, %arg1: memref<1x8x256xf32, #tpu.memory_space<vmem>>, %arg2: memref<8x1xf32, #tpu.memory_space<vmem>>, %arg3: memref<8x1xf32, #tpu.memory_space<vmem>>, %arg4: memref<1x8x256xf32, #tpu.memory_space<vmem>>) attributes {dimension_semantics = [#tpu.dimension_semantics<parallel>], iteration_bounds = array<i64: 2>, scalar_prefetch = 0 : i64, scratch_operands = 0 : i64, tpu.core_type = #tpu.core_type<tc>, window_params = [{transform_indices = @transform_0, window_bounds = array<i64: 1, 8, 256>}, {pipeline_mode = #tpu.pipeline_mode<synchronous>, transform_indices = @transform_1, window_bounds = array<i64: 8, 1>}, {pipeline_mode = #tpu.pipeline_mode<synchronous>, transform_indices = @transform_2, window_bounds = array<i64: 8, 1>}, {transform_indices = @transform_3, window_bounds = array<i64: 1, 8, 256>}]} {
    %c0 = arith.constant 0 : index
    %c0_0 = arith.constant 0 : index
    %c0_1 = arith.constant 0 : index
    %0 = vector.load %arg1[%c0, %c0_0, %c0_1] : memref<1x8x256xf32, #tpu.memory_space<vmem>>, vector<1x8x256xf32>
    %c0_2 = arith.constant 0 : index
    %c0_3 = arith.constant 0 : index
    %1 = vector.load %arg2[%c0_2, %c0_3] : memref<8x1xf32, #tpu.memory_space<vmem>>, vector<8x1xf32>
    %2 = vector.shape_cast %1 : vector<8x1xf32> to vector<1x8x1xf32>
    %3 = vector.broadcast %2 : vector<1x8x1xf32> to vector<1x8x256xf32>
    %4 = arith.mulf %0, %3 : vector<1x8x256xf32>
    %c0_4 = arith.constant 0 : index
    %c0_5 = arith.constant 0 : index
    %5 = vector.load %arg3[%c0_4, %c0_5] : memref<8x1xf32, #tpu.memory_space<vmem>>, vector<8x1xf32>
    %6 = vector.shape_cast %5 : vector<8x1xf32> to vector<1x8x1xf32>
    %7 = vector.broadcast %6 : vector<1x8x1xf32> to vector<1x8x256xf32>
    %8 = arith.addf %4, %7 : vector<1x8x256xf32>
    %c0_6 = arith.constant 0 : index
    %c0_7 = arith.constant 0 : index
    %c0_8 = arith.constant 0 : index
    %9 = vector.load %arg4[%c0_6, %c0_7, %c0_8] : memref<1x8x256xf32, #tpu.memory_space<vmem>>, vector<1x8x256xf32>
    tpu.vector_store %arg4[%c0_6, %c0_7, %c0_8], %8 {strides = array<i32>} : memref<1x8x256xf32, #tpu.memory_space<vmem>>, vector<1x8x256xf32>,
    return
  }
  func.func @transform_0(%arg0: i32) -> (i32, i32, i32) {
    %c0_i32 = arith.constant 0 : i32
    %c0_i32_0 = arith.constant 0 : i32
    %c0_i32_1 = arith.constant 0 : i32
    return %arg0, %c0_i32, %c0_i32_0 : i32, i32, i32
  }
  func.func @transform_1(%arg0: i32) -> (i32, i32) {
    %c0_i32 = arith.constant 0 : i32
    %c0_i32_0 = arith.constant 0 : i32
    %c0_i32_1 = arith.constant 0 : i32
    return %c0_i32, %c0_i32_0 : i32, i32
  }
  func.func @transform_2(%arg0: i32) -> (i32, i32) {
    %c0_i32 = arith.constant 0 : i32
    %c0_i32_0 = arith.constant 0 : i32
    %c0_i32_1 = arith.constant 0 : i32
    return %c0_i32, %c0_i32_0 : i32, i32
  }
  func.func @transform_3(%arg0: i32) -> (i32, i32, i32) {
    %c0_i32 = arith.constant 0 : i32
    %c0_i32_0 = arith.constant 0 : i32
    %c0_i32_1 = arith.constant 0 : i32
    return %arg0, %c0_i32, %c0_i32_0 : i32, i32, i32
  }
}

</mosaic_0001>

<bundles_post_ra>
// kernel: normed_conv.3
= control target key start
LH: loop header
LB: loop body
LE: loop exit
PB: predicated region body
PF: predicated region fallthrough
CT: control target
= control target key end

     0   :  { %s298_s12 = smov 0   ;;  %s321_s0 = inlined_call_operand.vmem [shape: f32[2,8,256], index: 0, kind: input, shape index: {}, may-alias: {0,3}]   ;;  %s322_s1 = inlined_call_operand.vmem [shape: f32[8,1], index: 1, kind: input, shape index: {}]   ;;  %s323_s2 = inlined_call_operand.vmem [shape: f32[8,1], index: 2, kind: input, shape index: {}]   ;;  %s324_s3 = inlined_call_operand.vmem [shape: f32[2,8,256], index: 3, kind: output, shape index: {}, may-alias: {0,3}]  }
   0x1 LB: > { %s246_s13 = sadd.s32 4294967295, %s275_s12   ;;  %p250_p0 = scmp.ge.s32.totalorder %s275_s12, 1  ;;  %s275_s12 = sphi %s298_s12, %s13_s12  }
   0x2   : > { %p137_p1 = scmp.lt.s32.totalorder %s275_s12, 3 }
   0x4   : > { %p138_p2 = pnand %p250_p0, %p137_p1 }
   0x5   : > { %p161_p3 = scmp.lt.s32.totalorder (!%p138_p2), %s246_s13, 1 }
   0x6   : > { %141 = sbr.rel (%p138_p2) target bundleno = 140 (0x8c), region = 32 }
   0xb   : > { %v173_v0 = vld [vmem:[%s322_s1] sm:$0xff]  ;;  %v277_v1 = vmov 0   ;;  %s326_s13 = smov (!%p161_p3, %s246_s13), 1 }
   0xc   : > { %268 = vset.pattern.permute.xlu0 %v277_v1  ;;  %v181_v2 = vld [vmem:[%s323_s2] sm:$0xff]  ;;  %s257_s18 = sshll.u32 %s326_s13, 4 }
   0xd   : > { %176 = vperm.xlu0 %268, %v173_v0   ;;  %s165_s21 = scalar_lea.vmem %s321_s0, %s257_s18  ;;  %s170_s24 = scalar_lea.vmem %s324_s3, %s257_s18 }
   0xe   : > { %v171_v4 = vld [vmem:[%s165_s21] sm:$0xff]  ;;  %v172_v5 = vld [vmem:[%s165_s21 + $0x8] sm:$0xff] }
  0x15   : > { %184 = vperm.xlu0 %268, %v181_v2  }
  0x7f   : > { %v177_v3 = vpop.permute.xlu0 %176 }
  0x80   : > { %v179_v6 = vmul.f32 %v177_v3, %v171_v4  ;;  %v180_v7 = vmul.f32 %v177_v3, %v172_v5 }
  0x87   : > { %v185_v8 = vpop.permute.xlu0 %184 }
  0x88   : > { %v187_v9 = vadd.f32 %v185_v8, %v179_v6  ;;  %v188_v10 = vadd.f32 %v185_v8, %v180_v7 }
  0x8a   : > { %189 = vst [vmem:[%s170_s24] sm:$0xff] %v187_v9 }
  0x8b   : > { %190 = vst [vmem:[%s170_s24 + $0x8] sm:$0xff] %v188_v10 }
  0x8c PF: > { %s13_s12 = sadd.s32 1, %s275_s12  }
  0x8d   : > { %p10_p4 = scmp.ge.s32.totalorder %s13_s12, 4  }
  0x8f   :  { %12 = sbr.rel (!%p10_p4) target bundleno = 1 (0x1), region = 62 }

// kernel: normed_conv.2
= control target key start
LH: loop header
LB: loop body
LE: loop exit
PB: predicated region body
PF: predicated region fallthrough
CT: control target
= control target key end

     0   :  { %s2760_s12 = smov 0   ;;  %s4036_s0 = inlined_call_operand.vmem [shape: f32[2,4,18,18], index: 0, kind: input, shape index: {}]   ;;  %s4037_s1 = inlined_call_operand.vmem [shape: f32[9,8,4], index: 1, kind: input, shape index: {}]   ;;  %s4038_s2 = inlined_call_operand.vmem [shape: f32[2,8,256], index: 2, kind: output, shape index: {0}]   ;;  %s4039_s3 = inlined_call_operand.vmem [shape: f32[2,2,8], index: 3, kind: output, shape index: {1}]  }
   0x1 LB: > { %s2637_s13 = sadd.s32 4294967295, %s2727_s12   ;;  %p2641_p0 = scmp.ge.s32.totalorder %s2727_s12, 1  ;;  %s2727_s12 = sphi %s2760_s12, %s14_s12  }
   0x2   : > { %p140_p1 = scmp.lt.s32.totalorder %s2727_s12, 3 }
   0x4   : > { %p141_p2 = pnand %p2641_p0, %p140_p1 }
   0x5   : > { %p168_p3 = scmp.lt.s32.totalorder (!%p141_p2), %s2637_s13, 1  ;;  %s2731_s18 = smov (!%p141_p2), 64  }
   0x6   : > { %144 = sbr.rel (%p141_p2) target bundleno = 1141 (0x475), region = 28  ;;  %s2732_s19 = smov (!%p141_p2), 32  }
   0x7   : > { %s2733_s20 = smov (!%p141_p2), 96   ;;  %s2734_s21 = smov (!%p141_p2), 48  }
   0x8   : > { %s2735_s22 = smov (!%p141_p2), 16   ;;  %s2736_s23 = smov (!%p141_p2), 112  }
   0x9   : > { %s2737_s24 = smov (!%p141_p2), 80   ;;  %s2738_s25 = smov (!%p141_p2), 127  }
   0xa   : > { %s2739_s26 = smov (!%p141_p2), 126  }
   0xb   : > { %s4041_s13 = smov (!%p168_p3, %s2637_s13), 1  ;;  %v2729_v0 = vmov 1983009808   ;;  %vm195_vm0 = vcmask 1047556   ;;  %v2730_v9 = vmov 1934713408  }
   0xc   : > { %v200_v1 = vunpack.c.l.s4 %v2729_v0  ;;  %s2693_s14 = smul.u32 96, %s4041_s13  ;;  %v224_v10 = vunpack.c.l.s4 %v2730_v9  ;;  %vm363_vm1 = vcmask 130048   ;;  %vm365_vm2 = vcmask 261120  }
   0xd   : > { %vm367_vm3 = vcmask 392192   ;;  %vm369_vm4 = vcmask 523264   ;;  %vm371_vm5 = vcmask 654336   ;;  %vm373_vm6 = vcmask 785408  }
   0xe   : > { %s2774_s17 = scalar_lea.vmem %s4036_s0, %s2693_s14  ;;  %v2785_v5 = vunpack.c.0.s8 %v200_v1  ;;  %v2818_v25 = vunpack.c.0.s8 %v224_v10  ;;  %vm375_vm7 = vcmask 916480   ;;  %vm605_vm8 = vcmask 1043456  }
   0xf   : > { %v2777_v2 = vld [vmem:[%s2774_s17] sm:$0xff]  ;;  %v2780_v3 = vld [vmem:[%s2774_s17 + $0x18] sm:$0xff]  ;;  %v2783_v4 = vld [vmem:[%s2774_s17 + $0x30] sm:$0xff]  ;;  %vm964_vm9 = vcmask 1046528   ;;  %vm1746_vm10 = vcmask 1045504   ;;  %vm601_vm11 = vcmask 31744  }
  0x10   : > { %v2788_v6 = vld [vmem:[%s2774_s17 + $0x48] sm:$0xff]  ;;  %v197_v7 = vrot.slane %v2777_v2, 4  ;;  %v209_v8 = vrot.slane %v2780_v3, 4  ;;  %v194_v11 = vrot.slane %v2783_v4, 4  ;;  %v2795_v13 = vld [vmem:[%s2774_s17 + $0x38] sm:$0xff]  ;;  %v2798_v14 = vld [vmem:[%s2774_s17 + $0x50] sm:$0xff] }
  0x11   : > { %v207_v12 = vrot.slane %v2788_v6, 4  ;;  %v2807_v18 = vld [vmem:[%s2774_s17 + $0x8] sm:$0xff]  ;;  %v251_v19 = vrot.slane %v2795_v13, 4  ;;  %v2816_v24 = vld [vmem:[%s2774_s17 + $0x20] sm:$0xff]  ;;  %v263_v27 = vrot.slane %v2798_v14, 4  ;;  %vm2546_vm12 = vcmask 1040384  }
  0x12   : > { %v198_v15 = vsel %vm195_vm0, %v2783_v4, %v197_v7  ;;  %v210_v16 = vsel %vm195_vm0, %v2788_v6, %v209_v8  ;;  %v196_v17 = vsel %vm195_vm0, %v194_v11, %v2777_v2  ;;  %v265_v34 = vrot.slane %v2816_v24, 4 }
  0x13   : > { %v206_v20 = vperm.slane %v198_v15, %v2785_v5  ;;  %v218_v21 = vperm.slane %v210_v16, %v2785_v5  ;;  %v202_v22 = vperm.slane %v196_v17, %v2785_v5  ;;  %v208_v23 = vsel %vm195_vm0, %v207_v12, %v2780_v3 }
  0x14   : > { %v214_v26 = vperm.slane %v208_v23, %v2785_v5  ;;  %v252_v31 = vsel %vm195_vm0, %v251_v19, %v2807_v18  ;;  %v264_v33 = vsel %vm195_vm0, %v263_v27, %v2816_v24  ;;  %v253_v50 = vrot.slane %v2807_v18, 4 }
  0x15   : > { %v231_v28 = vrot.slane %v218_v21, 4  ;;  %v233_v29 = vrot.slane %v206_v20, 4  ;;  %v221_v30 = vrot.slane %v202_v22, 4  ;;  %v270_v37 = vperm.slane %v264_v33, %v2785_v5 }
  0x16   : > { %v219_v32 = vrot.slane %v214_v26, 4  ;;  %v258_v42 = vperm.slane %v252_v31, %v2785_v5  ;;  %v266_v51 = vsel %vm195_vm0, %v2798_v14, %v265_v34  ;;  %v254_v57 = vsel %vm195_vm0, %v2795_v13, %v253_v50 }
  0x17   : > { %v232_v35 = vsel %vm195_vm0, %v231_v28, %v206_v20  ;;  %v222_v36 = vsel %vm195_vm0, %v214_v26, %v221_v30  ;;  %v234_v38 = vsel %vm195_vm0, %v218_v21, %v233_v29  ;;  %v275_v44 = vrot.slane %v270_v37, 4 }
  0x18   : > { %v238_v39 = vperm.slane %v232_v35, %v2818_v25  ;;  %v230_v40 = vperm.slane %v222_v36, %v2818_v25  ;;  %v220_v41 = vsel %vm195_vm0, %v219_v32, %v202_v22  ;;  %v242_v45 = vperm.slane %v234_v38, %v2818_v25 }
  0x19   : > { %v2836_v43 = vperm.slane %v220_v41, %v2818_v25  ;;  %v277_v46 = vrot.slane %v258_v42, 4  ;;  %v276_v49 = vsel %vm195_vm0, %v275_v44, %v258_v42  ;;  %v274_v56 = vperm.slane %v266_v51, %v2785_v5 }
  0x1a   : > { %320 = vrot.lane.b32.xlu1 %v238_v39, %s2731_s18  ;;  %312 = vrot.lane.b32.xlu0 %v230_v40, %s2732_s19  ;;  %v245_v47 = vrot.slane %v230_v40, 4  ;;  %v2851_v55 = vperm.slane %v276_v49, %v2818_v25  ;;  %v249_v60 = vrot.slane %v242_v45, 4  ;;  %v262_v61 = vperm.slane %v254_v57, %v2785_v5 }
  0x1b   : > { %v243_v48 = vrot.slane %v2836_v43, 4  ;;  %328 = vrot.lane.b32.xlu2 %v242_v45, %s2733_s20  ;;  %v278_v52 = vsel %vm195_vm0, %v270_v37, %v277_v46  ;;  %v287_v62 = vrot.slane %v274_v56, 4  ;;  %v247_v63 = vrot.slane %v238_v39, 4 }
  0x1c   : > { %v246_v53 = vsel %vm195_vm0, 0.0, %v245_v47  ;;  %v286_v58 = vperm.slane %v278_v52, %v2818_v25  ;;  %v299_v59 = vrot.slane %v2851_v55, 4  ;;  %v250_v1 = vsel %vm195_vm0, 0.0, %v249_v60 }
  0x1d   : > { %v244_v54 = vsel %vm195_vm0, 0.0, %v243_v48  ;;  %v288_v7 = vsel %vm195_vm0, %v287_v62, %v262_v61  ;;  %v289_v8 = vrot.slane %v262_v61, 4  ;;  %v248_v9 = vsel %vm195_vm0, 0.0, %v247_v63 }
  0x1e   : > { %v300_v0 = vsel %vm195_vm0, 0.0, %v299_v59  ;;  %v294_v10 = vperm.slane %v288_v7, %v2818_v25  ;;  %v301_v11 = vrot.slane %v286_v58, 4  ;;  %vm2549_vm13 = vcmask 58368  }
  0x1f   : > { %v290_v12 = vsel %vm195_vm0, %v274_v56, %v289_v8 }
  0x20   : > { %v303_v15 = vrot.slane %v294_v10, 4  ;;  %v302_v16 = vsel %vm195_vm0, 0.0, %v301_v11  ;;  %v298_v17 = vperm.slane %v290_v12, %v2818_v25 }
  0x22   : > { %316 = vrot.lane.b32.xlu1 %v246_v53, %s2734_s21  ;;  %308 = vrot.lane.b32.xlu0 %v244_v54, %s2735_s22  ;;  %v304_v19 = vsel %vm195_vm0, 0.0, %v303_v15  ;;  %v305_v20 = vrot.slane %v298_v17, 4 }
  0x23   : > { %340 = vrot.lane.b32.xlu2 %v286_v58, %s2732_s19 }
  0x24   : > { %v306_v21 = vsel %vm195_vm0, 0.0, %v305_v20 }
  0x2a   : > { %336 = vrot.lane.b32.xlu1 %v300_v0, %s2735_s22  ;;  %332 = vrot.lane.b32.xlu0 %v250_v1, %s2736_s23 }
  0x2b   : > { %324 = vrot.lane.b32.xlu2 %v248_v9, %s2737_s24 }
  0x32   : > { %348 = vrot.lane.b32.xlu1 %v294_v10, %s2731_s18  ;;  %344 = vrot.lane.b32.xlu0 %v302_v16, %s2734_s21 }
  0x33   : > { %352 = vrot.lane.b32.xlu2 %v304_v19, %s2737_s24 }
  0x3a   : > { %360 = vrot.lane.b32.xlu1 %v306_v21, %s2736_s23  ;;  %356 = vrot.lane.b32.xlu0 %v298_v17, %s2733_s20 }
  0x3b   : > { %393 = vrot.lane.b32.xlu2 %v2777_v2, %s2738_s25 }
  0x42   : > { %397 = vrot.lane.b32.xlu1 %v2780_v3, %s2738_s25  ;;  %395 = vrot.lane.b32.xlu0 %v2807_v18, %s2738_s25 }
  0x43   : > { %399 = vrot.lane.b32.xlu2 %v2816_v24, %s2738_s25 }
  0x4a   : > { %403 = vrot.lane.b32.xlu1 %v2795_v13, %s2738_s25  ;;  %401 = vrot.lane.b32.xlu0 %v2783_v4, %s2738_s25 }
  0x4b   : > { %405 = vrot.lane.b32.xlu2 %v2788_v6, %s2738_s25 }
  0x52   : > { %703 = vrot.lane.b32.xlu1 %v2807_v18, %s2739_s26  ;;  %407 = vrot.lane.b32.xlu0 %v2798_v14, %s2738_s25 }
  0x53   : > { %705 = vrot.lane.b32.xlu2 %v2780_v3, %s2739_s26 }
  0x5a   : > { %709 = vrot.lane.b32.xlu1 %v2783_v4, %s2739_s26  ;;  %701 = vrot.lane.b32.xlu0 %v2777_v2, %s2739_s26 }
  0x5b   : > { %711 = vrot.lane.b32.xlu2 %v2795_v13, %s2739_s26 }
  0x62   : > { %715 = vrot.lane.b32.xlu1 %v2798_v14, %s2739_s26  ;;  %707 = vrot.lane.b32.xlu0 %v2816_v24, %s2739_s26 }
  0x6a   : > { %713 = vrot.lane.b32.xlu0 %v2788_v6, %s2739_s26 }
  0x75   : > { %v329_v22 = vpop.permute.xlu2 %328 }
  0x7d   : > { %v341_v23 = vpop.permute.xlu2 %340 }
  0x85   : > { %v325_v28 = vpop.permute.xlu2 %324 }
  0x8c   : > { %v321_v26 = vpop.permute.xlu1 %320  ;;  %v313_v27 = vpop.permute.xlu0 %312 }
  0x8d   : > { %v353_v32 = vpop.permute.xlu2 %352 }
  0x94   : > { %v317_v29 = vpop.permute.xlu1 %316  ;;  %v309_v30 = vpop.permute.xlu0 %308 }
  0x95   : > { %v364_v31 = vsel %vm363_vm1, %v2836_v43, %v309_v30  ;;  %v394_v41 = vpop.permute.xlu2 %393 }
  0x96   : > { %v366_v33 = vsel %vm365_vm2, %v364_v31, %v313_v27  ;;  %v419_v59 = vrot.slane %v394_v41, 4 }
  0x97   : > { %v368_v34 = vsel %vm367_vm3, %v366_v33, %v317_v29 }
  0x98   : > { %v370_v35 = vsel %vm369_vm4, %v368_v34, %v321_v26 }
  0x99   : > { %v372_v36 = vsel %vm371_vm5, %v370_v35, %v325_v28 }
  0x9a   : > { %v374_v39 = vsel %vm373_vm6, %v372_v36, %v329_v22 }
  0x9c   : > { %v337_v37 = vpop.permute.xlu1 %336  ;;  %v333_v38 = vpop.permute.xlu0 %332 }
  0x9d   : > { %v376_v40 = vsel %vm375_vm7, %v374_v39, %v333_v38  ;;  %v377_v42 = vsel %vm363_vm1, %v2851_v55, %v337_v37  ;;  %v400_v48 = vpop.permute.xlu2 %399 }
  0x9e   : > { %2651 = vmatpush.msk.msra.mxu2 %vm605_vm8, %v376_v40  ;;  %v378_v43 = vsel %vm365_vm2, %v377_v42, %v341_v23  ;;  %v487_v19 = vrot.slane %v400_v48, 4 }
  0xa4   : > { %v349_v44 = vpop.permute.xlu1 %348  ;;  %v345_v45 = vpop.permute.xlu0 %344 }
  0xa5   : > { %v379_v46 = vsel %vm367_vm3, %v378_v43, %v345_v45  ;;  %v406_v54 = vpop.permute.xlu2 %405 }
  0xa6   : > { %v380_v47 = vsel %vm369_vm4, %v379_v46, %v349_v44  ;;  %v429_v61 = vrot.slane %v406_v54, 4 }
  0xa7   : > { %v381_v50 = vsel %vm371_vm5, %v380_v47, %v353_v32 }
  0xac   : > { %v361_v49 = vpop.permute.xlu1 %360  ;;  %v357_v51 = vpop.permute.xlu0 %356 }
  0xad   : > { %v382_v52 = vsel %vm373_vm6, %v381_v50, %v357_v51  ;;  %v706_v47 = vpop.permute.xlu2 %705 }
  0xae   : > { %v383_v53 = vsel %vm375_vm7, %v382_v52, %v361_v49 }
  0xaf   : > { %2653 = vmatpush.msk.msra.mxu3 %vm605_vm8, %v383_v53 }
  0xb4   : > { %v398_v55 = vpop.permute.xlu1 %397  ;;  %v396_v56 = vpop.permute.xlu0 %395 }
  0xb5   : > { %v431_v57 = vrot.slane %v398_v55, 4  ;;  %v475_v62 = vrot.slane %v396_v56, 4  ;;  %v430_v10 = vsel %vm195_vm0, %v429_v61, %v398_v55  ;;  %v2992_v55 = vpop.permute.xlu2 %711  ;;  %v739_v61 = vrot.slane %v706_v47, 4 }
  0xb6   : > { %v2941_v20 = vperm.slane %v430_v10, %v2785_v5 }
  0xb7   : > { %v432_v58 = vsel %vm195_vm0, %v406_v54, %v431_v57  ;;  %v781_v57 = vrot.slane %v2992_v55, 4 }
  0xb8   : > { %v440_v60 = vperm.slane %v432_v58, %v2785_v5 }
  0xba   : > { %v453_v1 = vrot.slane %v440_v60, 4 }
  0xbc   : > { %v404_v63 = vpop.permute.xlu1 %403  ;;  %v402_v0 = vpop.permute.xlu0 %401 }
  0xbd   : > { %v473_v7 = vrot.slane %v404_v63, 4  ;;  %v417_v8 = vrot.slane %v402_v0, 4  ;;  %v420_v9 = vsel %vm195_vm0, %v402_v0, %v419_v59  ;;  %v476_v12 = vsel %vm195_vm0, %v404_v63, %v475_v62 }
  0xbe   : > { %v428_v11 = vperm.slane %v420_v9, %v2785_v5  ;;  %v484_v23 = vperm.slane %v476_v12, %v2785_v5 }
  0xbf   : > { %v418_v15 = vsel %vm195_vm0, %v417_v8, %v394_v41  ;;  %v474_v21 = vsel %vm195_vm0, %v473_v7, %v396_v56 }
  0xc0   : > { %v2938_v16 = vperm.slane %v418_v15, %v2785_v5  ;;  %v455_v17 = vrot.slane %v428_v11, 4  ;;  %v454_v22 = vsel %vm195_vm0, %v453_v1, %v428_v11  ;;  %v2955_v30 = vperm.slane %v474_v21, %v2785_v5 }
  0xc1   : > { %v2947_v26 = vperm.slane %v454_v22, %v2818_v25  ;;  %v511_v37 = vrot.slane %v484_v23, 4 }
  0xc2   : > { %v456_v27 = vsel %vm195_vm0, %v440_v60, %v455_v17  ;;  %v443_v28 = vrot.slane %v2938_v16, 4  ;;  %v499_v43 = vrot.slane %v2955_v30, 4 }
  0xc3   : > { %v2952_v29 = vperm.slane %v456_v27, %v2818_v25  ;;  %542 = vrot.lane.b32.xlu1 %v2947_v26, %s2731_s18 }
  0xc4   : > { %v2959_v31 = vpop.permute.xlu1 %703  ;;  %v408_v32 = vpop.permute.xlu0 %407  ;;  %v444_v33 = vsel %vm195_vm0, %v2941_v20, %v443_v28 }
  0xc5   : > { %v485_v34 = vrot.slane %v408_v32, 4  ;;  %v488_v35 = vsel %vm195_vm0, %v408_v32, %v487_v19  ;;  %550 = vrot.lane.b32.xlu0 %v2952_v29, %s2733_s20  ;;  %v2967_v36 = vperm.slane %v444_v33, %v2818_v25  ;;  %v782_v0 = vsel %vm195_vm0, %v781_v57, %v2959_v31 }
  0xc6   : > { %v496_v38 = vperm.slane %v488_v35, %v2785_v5  ;;  %v788_v11 = vperm.slane %v782_v0, %v2785_v5  ;;  %v441_v33 = vrot.slane %v2941_v20, 4  ;;  %v471_v57 = vrot.slane %v2952_v29, 4 }
  0xc7   : > { %v486_v39 = vsel %vm195_vm0, %v485_v34, %v400_v48  ;;  %534 = vrot.lane.b32.xlu2 %v2967_v36, %s2732_s19  ;;  %v976_v29 = vrot.slane %v2795_v13, 1 }
  0xc8   : > { %v492_v40 = vperm.slane %v486_v39, %v2785_v5  ;;  %v509_v41 = vrot.slane %v496_v38, 4  ;;  %v512_v42 = vsel %vm195_vm0, %v496_v38, %v511_v37  ;;  %v807_v37 = vrot.slane %v788_v11, 4 }
  0xc9   : > { %v2977_v44 = vperm.slane %v512_v42, %v2818_v25  ;;  %v442_v20 = vsel %vm195_vm0, %v441_v33, %v2938_v16  ;;  %v467_v42 = vrot.slane %v2967_v36, 4 }
  0xca   : > { %v500_v45 = vsel %vm195_vm0, %v492_v40, %v499_v43  ;;  %v510_v46 = vsel %vm195_vm0, %v509_v41, %v484_v23  ;;  %v497_v38 = vrot.slane %v492_v40, 4  ;;  %v469_v41 = vrot.slane %v2947_v26, 4 }
  0xcb   : > { %v2982_v48 = vperm.slane %v500_v45, %v2818_v25  ;;  %578 = vrot.lane.b32.xlu1 %v2977_v44, %s2733_s20  ;;  %v516_v50 = vperm.slane %v510_v46, %v2818_v25  ;;  %v3039_v45 = vperm.slane %v442_v20, %v2818_v25  ;;  %v468_v16 = vsel %vm195_vm0, 0.0, %v467_v42 }
  0xcc   : > { %v702_v49 = vpop.permute.xlu0 %701  ;;  %v710_v51 = vpop.permute.xlu1 %709  ;;  %v498_v40 = vsel %vm195_vm0, %v497_v38, %v2955_v30  ;;  %v470_v46 = vsel %vm195_vm0, 0.0, %v469_v41 }
  0xcd   : > { %562 = vrot.lane.b32.xlu0 %v2982_v48, %s2732_s19  ;;  %v727_v52 = vrot.slane %v702_v49, 4  ;;  %v725_v54 = vrot.slane %v710_v51, 4  ;;  %v3046_v26 = vperm.slane %v498_v40, %v2818_v25  ;;  %v465_v36 = vrot.slane %v3039_v45, 4 }
  0xcf   : > { %570 = vrot.lane.b32.xlu2 %v516_v50, %s2731_s18  ;;  %v728_v56 = vsel %vm195_vm0, %v710_v51, %v727_v52  ;;  %v726_v59 = vsel %vm195_vm0, %v725_v54, %v702_v49  ;;  %v521_v30 = vrot.slane %v3046_v26, 4  ;;  %v466_v49 = vsel %vm195_vm0, 0.0, %v465_v36 }
  0xd0   : > { %v736_v60 = vperm.slane %v728_v56, %v2785_v5  ;;  %v732_v63 = vperm.slane %v726_v59, %v2785_v5  ;;  %v527_v59 = vrot.slane %v2977_v44, 4  ;;  %v472_v44 = vsel %vm195_vm0, 0.0, %v471_v57 }
  0xd1   : > { %v522_v51 = vsel %vm195_vm0, 0.0, %v521_v30 }
  0xd2   : > { %v763_v10 = vrot.slane %v736_v60, 4  ;;  %v751_v17 = vrot.slane %v732_v63, 4 }
  0xd4   : > { %v2990_v53 = vpop.permute.xlu0 %707  ;;  %v2996_v58 = vpop.permute.xlu1 %715 }
  0xd5   : > { %v793_v62 = vrot.slane %v2996_v58, 4 }
  0xd7   : > { %v794_v12 = vsel %vm195_vm0, %v793_v62, %v2990_v53  ;;  %v795_v62 = vrot.slane %v2990_v53, 4  ;;  %v971_v53 = vrot.slane %v2816_v24, 1 }
  0xd8   : > { %v800_v27 = vperm.slane %v794_v12, %v2785_v5  ;;  %v965_v12 = vrot.slane %v2777_v2, 1 }
  0xda   : > { %v808_v39 = vsel %vm195_vm0, %v800_v27, %v807_v37  ;;  %v805_v54 = vrot.slane %v800_v27, 4 }
  0xdb   : > { %v3034_v43 = vperm.slane %v808_v39, %v2818_v25 }
  0xdc   : > { %v714_v1 = vpop.permute.xlu0 %713 }
  0xdd   : > { %v737_v7 = vrot.slane %v714_v1, 4  ;;  %v740_v8 = vsel %vm195_vm0, %v714_v1, %v739_v61  ;;  %v783_v61 = vrot.slane %v2959_v31, 4  ;;  %v806_v1 = vsel %vm195_vm0, %v805_v54, %v788_v11 }
  0xde   : > { %v748_v9 = vperm.slane %v740_v8, %v2785_v5  ;;  %v975_v8 = vrot.slane %v2783_v4, 1  ;;  %v970_v31 = vrot.slane %v2780_v3, 1  ;;  %v796_v4 = vsel %vm195_vm0, %v2996_v58, %v795_v62 }
  0xdf   : > { %v738_v15 = vsel %vm195_vm0, %v737_v7, %v706_v47  ;;  %v525_v47 = vrot.slane %v516_v50, 4  ;;  %v980_v50 = vrot.slane %v2788_v6, 1  ;;  %v528_v6 = vsel %vm195_vm0, 0.0, %v527_v59  ;;  %v3144_v59 = vld [vmem:[%s2774_s17 + $0x28] sm:$0x3] }
  0xe0   : > { %v744_v19 = vperm.slane %v738_v15, %v2785_v5  ;;  %v761_v21 = vrot.slane %v748_v9, 4  ;;  %v764_v22 = vsel %vm195_vm0, %v748_v9, %v763_v10  ;;  %v3082_v10 = vperm.slane %v806_v1, %v2818_v25 }
  0xe1   : > { %v3013_v23 = vperm.slane %v764_v22, %v2818_v25  ;;  %v526_v52 = vsel %vm195_vm0, 0.0, %v525_v47  ;;  %v784_v3 = vsel %vm195_vm0, %v2992_v55, %v783_v61  ;;  %v966_v15 = vrot.slane %v2807_v18, 1 }
  0xe2   : > { %v762_v28 = vsel %vm195_vm0, %v761_v21, %v736_v60  ;;  %v752_v32 = vsel %vm195_vm0, %v744_v19, %v751_v17  ;;  %v749_v56 = vrot.slane %v744_v19, 4  ;;  %v981_v60 = vrot.slane %v2798_v14, 1 }
  0xe3   : > { %858 = vrot.lane.b32.xlu1 %v3013_v23, %s2733_s20  ;;  %v768_v34 = vperm.slane %v762_v28, %v2818_v25  ;;  %v3023_v35 = vperm.slane %v752_v32, %v2818_v25  ;;  %v3096_v58 = vsel %vm964_vm9, %v975_v8, %v976_v29  ;;  %v523_v17 = vrot.slane %v2982_v48, 4 }
  0xe4   : > { %v750_v7 = vsel %vm195_vm0, %v749_v56, %v732_v63  ;;  %v3076_v9 = vsel %vm964_vm9, %v980_v50, %v981_v60  ;;  %v804_v21 = vperm.slane %v796_v4, %v2785_v5  ;;  %v3104_v55 = vsel %vm964_vm9, %v970_v31, %v971_v53  ;;  %v3141_v56 = vld [vmem:[%s2774_s17 + $0x40] sm:$0x3] }
  0xe5   : > { %850 = vrot.lane.b32.xlu2 %v768_v34, %s2731_s18  ;;  %842 = vrot.lane.b32.xlu0 %v3023_v35, %s2732_s19  ;;  %v777_v0 = vrot.slane %v768_v34, 4  ;;  %v3085_v11 = vperm.slane %v750_v7, %v2818_v25  ;;  %v1005_v19 = vrot.slane %v3076_v9, 4  ;;  %v792_v2 = vperm.slane %v784_v3, %v2785_v5  ;;  %v3153_v7 = vld [vmem:[%s2774_s17 + $0x58] sm:$0x3] }
  0xe6   : > { %v829_v22 = vrot.slane %v3082_v10, 4  ;;  %v993_v28 = vrot.slane %v3096_v58, 4  ;;  %v3113_v48 = vsel %vm964_vm9, %v965_v12, %v966_v15  ;;  %v524_v32 = vsel %vm195_vm0, 0.0, %v523_v17 }
  0xe7   : > { %v778_v63 = vsel %vm195_vm0, 0.0, %v777_v0  ;;  %v773_v27 = vrot.slane %v3085_v11, 4  ;;  %v1006_v33 = vsel %vm195_vm0, %v1005_v19, %v3104_v55  ;;  %v817_v34 = vrot.slane %v804_v21, 4 }
  0xe8   : > { %v819_v37 = vrot.slane %v792_v2, 4  ;;  %v830_v38 = vsel %vm195_vm0, 0.0, %v829_v22  ;;  %v994_v20 = vsel %vm195_vm0, %v993_v28, %v3113_v48  ;;  %v1012_v41 = vperm.slane %v1006_v33, %v2785_v5 }
  0xe9   : > { %v774_v39 = vsel %vm195_vm0, 0.0, %v773_v27  ;;  %v775_v42 = vrot.slane %v3023_v35, 4  ;;  %v818_v40 = vsel %vm195_vm0, %v817_v34, %v792_v2  ;;  %v1007_v54 = vrot.slane %v3104_v55, 4 }
  0xea   : > { %v820_v36 = vsel %vm195_vm0, %v804_v21, %v819_v37  ;;  %v1017_v30 = vrot.slane %v1012_v41, 4  ;;  %v831_v61 = vrot.slane %v3034_v43, 4  ;;  %v995_v0 = vrot.slane %v3113_v48, 4 }
  0xeb   : > { %870 = vrot.lane.b32.xlu1 %v3034_v43, %s2732_s19  ;;  %v776_v47 = vsel %vm195_vm0, 0.0, %v775_v42  ;;  %v828_v35 = vperm.slane %v820_v36, %v2818_v25  ;;  %v978_v8 = vrot.slane %v3141_v56, 1  ;;  %v973_v31 = vrot.slane %v3144_v59, 1 }
  0xec   : > { %v832_v3 = vsel %vm195_vm0, 0.0, %v831_v61  ;;  %v996_v12 = vsel %vm195_vm0, %v3096_v58, %v995_v0  ;;  %v983_v17 = vrot.slane %v3153_v7, 1 }
  0xed   : > { %546 = vrot.lane.b32.xlu2 %v470_v46, %s2737_s24  ;;  %538 = vrot.lane.b32.xlu0 %v468_v16, %s2734_s21  ;;  %v1000_v46 = vperm.slane %v994_v20, %v2785_v5  ;;  %v779_v16 = vrot.slane %v3013_v23, 4  ;;  %v835_v50 = vrot.slane %v828_v35, 4  ;;  %v3176_v22 = vsel %vm964_vm9, %v976_v29, %v978_v8 }
  0xee   : > { %v3183_v27 = vsel %vm964_vm9, %v971_v53, %v973_v31  ;;  %v3189_v33 = vsel %vm964_vm9, %v981_v60, %v983_v17  ;;  %v1049_v13 = vrot.slane %v3176_v22, 4 }
  0xef   : > { %v1018_v23 = vsel %vm195_vm0, %v1017_v30, %v1000_v46  ;;  %v1063_v53 = vrot.slane %v3183_v27, 4  ;;  %v1061_v14 = vrot.slane %v3189_v33, 4 }
  0xf0   : > { %v3150_v1 = vperm.slane %v1018_v23, %v2818_v25 }
  0xf1   : > { %v1064_v18 = vsel %vm195_vm0, %v3189_v33, %v1063_v53  ;;  %v1062_v42 = vsel %vm195_vm0, %v1061_v14, %v3183_v27 }
  0xf2   : > { %v1041_v19 = vrot.slane %v3150_v1, 4  ;;  %v1068_v30 = vperm.slane %v1062_v42, %v2785_v5 }
  0xf3   : > { %530 = vrot.lane.b32.xlu1 %v466_v49, %s2735_s22  ;;  %v824_v49 = vperm.slane %v818_v40, %v2818_v25 }
  0xf4   : > { %v1042_v29 = vsel %vm195_vm0, 0.0, %v1041_v19 }
  0xf5   : > { %558 = vrot.lane.b32.xlu2 %v522_v51, %s2735_s22  ;;  %574 = vrot.lane.b32.xlu0 %v526_v52, %s2737_s24  ;;  %v1019_v51 = vrot.slane %v1000_v46, 4  ;;  %v780_v52 = vsel %vm195_vm0, 0.0, %v779_v16  ;;  %v833_v57 = vrot.slane %v824_v49, 4  ;;  %v1072_v46 = vperm.slane %v1064_v18, %v2785_v5 }
  0xf7   : > { %v1020_v62 = vsel %vm195_vm0, %v1012_v41, %v1019_v51  ;;  %v834_v43 = vsel %vm195_vm0, 0.0, %v833_v57  ;;  %v1073_v51 = vrot.slane %v1068_v30, 4 }
  0xf8   : > { %v1028_v4 = vperm.slane %v1020_v62, %v2818_v25 }
  0xfa   : > { %v1043_v28 = vrot.slane %v1028_v4, 4 }
  0xfb   : > { %554 = vrot.lane.b32.xlu1 %v472_v44, %s2736_s23  ;;  %v1008_v44 = vsel %vm195_vm0, %v3076_v9, %v1007_v54 }
  0xfc   : > { %v1016_v21 = vperm.slane %v1008_v44, %v2785_v5  ;;  %v1044_v37 = vsel %vm195_vm0, 0.0, %v1043_v28 }
  0xfd   : > { %582 = vrot.lane.b32.xlu2 %v528_v6, %s2736_s23  ;;  %854 = vrot.lane.b32.xlu0 %v778_v63, %s2737_s24  ;;  %v3159_v6 = vld [vmem:[%s2774_s17 + $0x10] sm:$0x3]  ;;  %v836_v63 = vsel %vm195_vm0, 0.0, %v835_v50 }
  0xfe   : > { %v968_v2 = vrot.slane %v3159_v6, 1  ;;  %v1029_v34 = vrot.slane %v1016_v21, 4 }
 0x100   : > { %v3196_v24 = vsel %vm964_vm9, %v966_v15, %v968_v2 }
 0x101   : > { %v1050_v60 = vsel %vm195_vm0, %v1049_v13, %v3196_v24  ;;  %v1051_v20 = vrot.slane %v3196_v24, 4 }
 0x102   : > { %v1056_v41 = vperm.slane %v1050_v60, %v2785_v5 }
 0x103   : > { %566 = vrot.lane.b32.xlu1 %v524_v32, %s2734_s21  ;;  %v1004_v32 = vperm.slane %v996_v12, %v2785_v5  ;;  %v1052_v16 = vsel %vm195_vm0, %v3176_v22, %v1051_v20 }
 0x104   : > { %v1074_v50 = vsel %vm195_vm0, %v1073_v51, %v1056_v41 }
 0x105   : > { %866 = vrot.lane.b32.xlu0 %v830_v38, %s2735_s22  ;;  %838 = vrot.lane.b32.xlu2 %v774_v39, %s2735_s22  ;;  %v1031_v38 = vrot.slane %v1004_v32, 4  ;;  %v1030_v39 = vsel %vm195_vm0, %v1029_v34, %v1004_v32  ;;  %v3232_v44 = vperm.slane %v1074_v50, %v2818_v25 }
 0x106   : > { %v1036_v40 = vperm.slane %v1030_v39, %v2818_v25 }
 0x107   : > { %v1032_v15 = vsel %vm195_vm0, %v1016_v21, %v1031_v38 }
 0x108   : > { %v1040_v36 = vperm.slane %v1032_v15, %v2818_v25  ;;  %v1045_v54 = vrot.slane %v1036_v40, 4 }
 0x10a   : > { %v1046_v0 = vsel %vm195_vm0, 0.0, %v1045_v54 }
 0x10b   : > { %846 = vrot.lane.b32.xlu1 %v776_v47, %s2734_s21  ;;  %v1075_v47 = vrot.slane %v1056_v41, 4 }
 0x10d   : > { %878 = vrot.lane.b32.xlu0 %v824_v49, %s2731_s18  ;;  %862 = vrot.lane.b32.xlu2 %v780_v52, %s2736_s23  ;;  %v1060_v49 = vperm.slane %v1052_v16, %v2785_v5  ;;  %v1047_v52 = vrot.slane %v1040_v36, 4  ;;  %v1076_v23 = vsel %vm195_vm0, %v1068_v30, %v1075_v47 }
 0x10e   : > { %v1084_v62 = vperm.slane %v1076_v23, %v2818_v25 }
 0x10f   : > { %v1048_v61 = vsel %vm195_vm0, 0.0, %v1047_v52  ;;  %v1087_v12 = vrot.slane %v1060_v49, 4 }
 0x110   : > { %v1099_v31 = vrot.slane %v1084_v62, 4 }
 0x111   : > { %v1088_v21 = vsel %vm195_vm0, %v1072_v46, %v1087_v12 }
 0x112   : > { %v1096_v28 = vperm.slane %v1088_v21, %v2818_v25 }
 0x113   : > { %882 = vrot.lane.b32.xlu1 %v834_v43, %s2737_s24 }
 0x114   : > { %v1103_v32 = vrot.slane %v1096_v28, 4 }
 0x115   : > { %890 = vrot.lane.b32.xlu0 %v836_v63, %s2736_s23  ;;  %874 = vrot.lane.b32.xlu2 %v832_v3, %s2734_s21  ;;  %v1097_v63 = vrot.slane %v3232_v44, 4  ;;  %v1100_v3 = vsel %vm195_vm0, 0.0, %v1099_v31 }
 0x117   : > { %v1098_v19 = vsel %vm195_vm0, 0.0, %v1097_v63 }
 0x11b   : > { %1106 = vrot.lane.b32.xlu1 %v1042_v29, %s2735_s22  ;;  %v1104_v29 = vsel %vm195_vm0, 0.0, %v1103_v32 }
 0x11d   : > { %1114 = vrot.lane.b32.xlu0 %v1044_v37, %s2734_s21  ;;  %886 = vrot.lane.b32.xlu2 %v828_v35, %s2733_s20  ;;  %v1085_v35 = vrot.slane %v1072_v46, 4 }
 0x11f   : > { %v1086_v57 = vsel %vm195_vm0, %v1085_v35, %v1060_v49 }
 0x120   : > { %v1092_v8 = vperm.slane %v1086_v57, %v2818_v25 }
 0x121   : > { %v535_v43 = vpop.permute.xlu2 %534 }
 0x123   : > { %1118 = vrot.lane.b32.xlu1 %v1036_v40, %s2731_s18 }
 0x125   : > { %1126 = vrot.lane.b32.xlu0 %v1040_v36, %s2733_s20  ;;  %1110 = vrot.lane.b32.xlu2 %v1028_v4, %s2732_s19  ;;  %v1101_v4 = vrot.slane %v1092_v8, 4 }
 0x127   : > { %v1102_v17 = vsel %vm195_vm0, 0.0, %v1101_v4 }
 0x129   : > { %v571_v2 = vpop.permute.xlu2 %570 }
 0x12b   : > { %1130 = vrot.lane.b32.xlu1 %v1048_v61, %s2736_s23 }
 0x12d   : > { %1138 = vrot.lane.b32.xlu0 %v1084_v62, %s2732_s19  ;;  %1122 = vrot.lane.b32.xlu2 %v1046_v0, %s2737_s24 }
 0x133   : > { %1142 = vrot.lane.b32.xlu1 %v1100_v3, %s2734_s21 }
 0x135   : > { %1150 = vrot.lane.b32.xlu0 %v1102_v17, %s2737_s24  ;;  %1134 = vrot.lane.b32.xlu2 %v1098_v19, %s2735_s22  ;;  %v543_v34 = vpop.permute.xlu1 %542 }
 0x137   : > { %v551_v53 = vpop.permute.xlu0 %550 }
 0x13b   : > { %1154 = vrot.lane.b32.xlu1 %v1096_v28, %s2733_s20 }
 0x13d   : > { %1228 = vrot.lane.b32.xlu0 %v3113_v48, %s2738_s25  ;;  %1146 = vrot.lane.b32.xlu2 %v1092_v8, %s2731_s18  ;;  %v579_v38 = vpop.permute.xlu1 %578 }
 0x13f   : > { %v851_v13 = vpop.permute.xlu2 %850  ;;  %v563_v14 = vpop.permute.xlu0 %562 }
 0x143   : > { %1230 = vrot.lane.b32.xlu1 %v3196_v24, %s2738_s25 }
 0x145   : > { %1234 = vrot.lane.b32.xlu0 %v3183_v27, %s2738_s25  ;;  %1158 = vrot.lane.b32.xlu2 %v1104_v29, %s2736_s23 }
 0x147   : > { %v547_v37 = vpop.permute.xlu2 %546 }
 0x14b   : > { %1236 = vrot.lane.b32.xlu1 %v3096_v58, %s2738_s25 }
 0x14d   : > { %1240 = vrot.lane.b32.xlu0 %v3076_v9, %s2738_s25  ;;  %1232 = vrot.lane.b32.xlu2 %v3104_v55, %s2738_s25 }
 0x14f   : > { %v559_v60 = vpop.permute.xlu2 %558 }
 0x153   : > { %1242 = vrot.lane.b32.xlu1 %v3189_v33, %s2738_s25 }
 0x155   : > { %v859_v39 = vpop.permute.xlu1 %858  ;;  %1238 = vrot.lane.b32.xlu2 %v3176_v22, %s2738_s25 }
 0x157   : > { %v583_v20 = vpop.permute.xlu2 %582  ;;  %v843_v18 = vpop.permute.xlu0 %842 }
 0x15d   : > { %v871_v15 = vpop.permute.xlu1 %870 }
 0x15f   : > { %v839_v41 = vpop.permute.xlu2 %838  ;;  %v539_v42 = vpop.permute.xlu0 %538 }
 0x160   : > { %v893_v63 = vsel %vm363_vm1, %v3085_v11, %v839_v41 }
 0x161   : > { %v894_v12 = vsel %vm365_vm2, %v893_v63, %v843_v18 }
 0x165   : > { %v531_v40 = vpop.permute.xlu1 %530 }
 0x166   : > { %v585_v46 = vsel %vm363_vm1, %v3039_v45, %v531_v40  ;;  %v592_v45 = vsel %vm363_vm1, %v3046_v26, %v559_v60 }
 0x167   : > { %v586_v16 = vsel %vm365_vm2, %v585_v46, %v535_v43  ;;  %v863_v36 = vpop.permute.xlu2 %862  ;;  %v575_v30 = vpop.permute.xlu0 %574  ;;  %v593_v61 = vsel %vm365_vm2, %v592_v45, %v563_v14 }
 0x168   : > { %v587_v47 = vsel %vm367_vm3, %v586_v16, %v539_v42 }
 0x169   : > { %v588_v49 = vsel %vm369_vm4, %v587_v47, %v543_v34 }
 0x16a   : > { %v589_v35 = vsel %vm371_vm5, %v588_v49, %v547_v37 }
 0x16b   : > { %v590_v52 = vsel %vm373_vm6, %v589_v35, %v551_v53 }
 0x16d   : > { %v555_v51 = vpop.permute.xlu1 %554 }
 0x16e   : > { %v591_v23 = vsel %vm375_vm7, %v590_v52, %v555_v51 }
 0x16f   : > { %v875_v54 = vpop.permute.xlu2 %874  ;;  %2647 = vmatpush.msk.msra.mxu0 %vm605_vm8, %v591_v23  ;;  %v855_v57 = vpop.permute.xlu0 %854 }
 0x175   : > { %v567_v50 = vpop.permute.xlu1 %566 }
 0x176   : > { %v594_v62 = vsel %vm367_vm3, %v593_v61, %v567_v50 }
 0x177   : > { %v595_v0 = vsel %vm369_vm4, %v594_v62, %v571_v2  ;;  %v887_v8 = vpop.permute.xlu2 %886  ;;  %v867_v31 = vpop.permute.xlu0 %866 }
 0x178   : > { %v596_v43 = vsel %vm371_vm5, %v595_v0, %v575_v30  ;;  %v900_v17 = vsel %vm363_vm1, %v3082_v10, %v867_v31 }
 0x179   : > { %v597_v4 = vsel %vm373_vm6, %v596_v43, %v579_v38  ;;  %v901_v11 = vsel %vm365_vm2, %v900_v17, %v871_v15 }
 0x17a   : > { %v598_v3 = vsel %vm375_vm7, %v597_v4, %v583_v20  ;;  %v902_v53 = vsel %vm367_vm3, %v901_v11, %v875_v54 }
 0x17b   : > { %2649 = vmatpush.msk.msra.mxu1 %vm605_vm8, %v598_v3 }
 0x17d   : > { %v847_v26 = vpop.permute.xlu1 %846 }
 0x17e   : > { %v895_v19 = vsel %vm367_vm3, %v894_v12, %v847_v26 }
 0x17f   : > { %v896_v21 = vsel %vm369_vm4, %v895_v19, %v851_v13  ;;  %v879_v2 = vpop.permute.xlu0 %878  ;;  %v1111_v28 = vpop.permute.xlu2 %1110 }
 0x180   : > { %v897_v32 = vsel %vm371_vm5, %v896_v21, %v855_v57  ;;  %v903_v10 = vsel %vm369_vm4, %v902_v53, %v879_v2 }
 0x181   : > { %v898_v29 = vsel %vm373_vm6, %v897_v32, %v859_v39 }
 0x182   : > { %v899_v34 = vsel %vm375_vm7, %v898_v29, %v863_v36 }
 0x183   : > { %2656 = vmatpush.msk.msrb.mxu0 %vm605_vm8, %v899_v34 }
 0x185   : > { %v883_v37 = vpop.permute.xlu1 %882 }
 0x186   : > { %v904_v38 = vsel %vm371_vm5, %v903_v10, %v883_v37 }
 0x187   : > { %v891_v13 = vpop.permute.xlu0 %890  ;;  %v905_v14 = vsel %vm373_vm6, %v904_v38, %v887_v8  ;;  %v1123_v20 = vpop.permute.xlu2 %1122 }
 0x188   : > { %v906_v60 = vsel %vm375_vm7, %v905_v14, %v891_v13 }
 0x189   : > { %2658 = vmatpush.msk.msrb.mxu1 %vm605_vm8, %v906_v60 }
 0x18d   : > { %v1107_v39 = vpop.permute.xlu1 %1106 }
 0x18e   : > { %v1161_v15 = vsel %vm363_vm1, %v3150_v1, %v1107_v39 }
 0x18f   : > { %v1115_v18 = vpop.permute.xlu0 %1114  ;;  %v1162_v41 = vsel %vm365_vm2, %v1161_v15, %v1111_v28  ;;  %v1135_v42 = vpop.permute.xlu2 %1134 }
 0x190   : > { %v1163_v46 = vsel %vm367_vm3, %v1162_v41, %v1115_v18  ;;  %v1168_v52 = vsel %vm363_vm1, %v3232_v44, %v1135_v42 }
 0x195   : > { %v1119_v40 = vpop.permute.xlu1 %1118 }
 0x196   : > { %v1164_v16 = vsel %vm369_vm4, %v1163_v46, %v1119_v40 }
 0x197   : > { %v1127_v36 = vpop.permute.xlu0 %1126  ;;  %v1165_v30 = vsel %vm371_vm5, %v1164_v16, %v1123_v20  ;;  %v1147_v49 = vpop.permute.xlu2 %1146 }
 0x198   : > { %v1166_v47 = vsel %vm373_vm6, %v1165_v30, %v1127_v36 }
 0x19d   : > { %v1131_v35 = vpop.permute.xlu1 %1130 }
 0x19e   : > { %v1167_v51 = vsel %vm375_vm7, %v1166_v47, %v1131_v35 }
 0x19f   : > { %2661 = vmatpush.msk.msrb.mxu2 %vm605_vm8, %v1167_v51  ;;  %v1139_v1 = vpop.permute.xlu0 %1138  ;;  %v1159_v57 = vpop.permute.xlu2 %1158 }
 0x1a0   : > { %v1169_v54 = vsel %vm365_vm2, %v1168_v52, %v1139_v1 }
 0x1a5   : > { %v1143_v23 = vpop.permute.xlu1 %1142 }
 0x1a6   : > { %v1170_v45 = vsel %vm367_vm3, %v1169_v54, %v1143_v23 }
 0x1a7   : > { %v1151_v50 = vpop.permute.xlu0 %1150  ;;  %v1171_v61 = vsel %vm369_vm4, %v1170_v45, %v1147_v49  ;;  %v1233_v44 = vpop.permute.xlu2 %1232 }
 0x1a8   : > { %v1172_v62 = vsel %vm371_vm5, %v1171_v61, %v1151_v50  ;;  %v1266_v26 = vrot.slane %v1233_v44, 4 }
 0x1ad   : > { %v1155_v0 = vpop.permute.xlu1 %1154 }
 0x1ae   : > { %v1173_v8 = vsel %vm373_vm6, %v1172_v62, %v1155_v0 }
 0x1af   : > { %v1229_v31 = vpop.permute.xlu0 %1228  ;;  %v1174_v43 = vsel %vm375_vm7, %v1173_v8, %v1159_v57  ;;  %v1239_v3 = vpop.permute.xlu2 %1238 }
 0x1b0   : > { %2663 = vmatpush.msk.msrb.mxu3 %vm605_vm8, %v1174_v43  ;;  %v1254_v12 = vrot.slane %v1229_v31, 4  ;;  %v1308_v21 = vrot.slane %v1239_v3, 4 }
 0x1b5   : > { %v1231_v4 = vpop.permute.xlu1 %1230 }
 0x1b6   : > { %v1310_v17 = vrot.slane %v1231_v4, 4  ;;  %v1309_v14 = vsel %vm195_vm0, %v1308_v21, %v1231_v4 }
 0x1b7   : > { %v1235_v63 = vpop.permute.xlu0 %1234  ;;  %v1315_v40 = vperm.slane %v1309_v14, %v2785_v5 }
 0x1b8   : > { %v1311_v10 = vsel %vm195_vm0, %v1239_v3, %v1310_v17  ;;  %v1322_v42 = vrot.slane %v1235_v63, 4  ;;  %v2713_v3 = vld [vmem:[%s2774_s17 + $0x50] sm:$0xff]  ;;  %v2714_v17 = vld [vmem:[%s2774_s17 + $0x48] sm:$0xff] }
 0x1b9   : > { %v1319_v41 = vperm.slane %v1311_v10, %v2785_v5  ;;  %v1334_v45 = vrot.slane %v1315_v40, 4 }
 0x1bb   : > { %v1346_v52 = vrot.slane %v1319_v41, 4 }
 0x1bd   : > { %v1237_v19 = vpop.permute.xlu1 %1236 }
 0x1be   : > { %v1252_v2 = vrot.slane %v1237_v19, 4  ;;  %v1255_v28 = vsel %vm195_vm0, %v1237_v19, %v1254_v12  ;;  %v1765_v12 = vrot.slane %v3153_v7, 2  ;;  %v1762_v19 = vrot.slane %v2714_v17, 2  ;;  %v2715_v7 = vld [vmem:[%s2774_s17 + $0x20] sm:$0xff] }
 0x1bf   : > { %v1263_v32 = vperm.slane %v1255_v28, %v2785_v5  ;;  %v1241_v11 = vpop.permute.xlu0 %1240  ;;  %v1755_v28 = vrot.slane %v3144_v59, 2 }
 0x1c0   : > { %v1253_v29 = vsel %vm195_vm0, %v1252_v2, %v1229_v31  ;;  %v1264_v34 = vrot.slane %v1241_v11, 4  ;;  %v1267_v53 = vsel %vm195_vm0, %v1241_v11, %v1266_v26  ;;  %v1763_v26 = vrot.slane %v2713_v3, 2  ;;  %v2717_v11 = vld [vmem:[%s2774_s17 + $0x30] sm:$0xff] }
 0x1c1   : > { %v1259_v37 = vperm.slane %v1253_v29, %v2785_v5  ;;  %v1290_v38 = vrot.slane %v1263_v32, 4  ;;  %v1275_v13 = vperm.slane %v1267_v53, %v2785_v5  ;;  %v1753_v2 = vrot.slane %v2715_v7, 2 }
 0x1c2   : > { %v1265_v60 = vsel %vm195_vm0, %v1264_v34, %v1233_v44  ;;  %v1757_v29 = vrot.slane %v2717_v11, 2  ;;  %v2718_v34 = vld [vmem:[%s2774_s17 + $0x38] sm:$0xff] }
 0x1c3   : > { %v1278_v20 = vrot.slane %v1259_v37, 4  ;;  %v1271_v39 = vperm.slane %v1265_v60, %v2785_v5  ;;  %v1288_v18 = vrot.slane %v1275_v13, 4  ;;  %v3331_v15 = vsel %vm195_vm0, %v1275_v13, %v1290_v38 }
 0x1c4   : > { %v1758_v53 = vrot.slane %v2718_v34, 2  ;;  %v1756_v38 = vsel %vm1746_vm10, %v1753_v2, %v1755_v28 }
 0x1c5   : > { %v1276_v46 = vrot.slane %v1271_v39, 4  ;;  %v1243_v16 = vpop.permute.xlu1 %1242  ;;  %v1279_v36 = vsel %vm195_vm0, %v1271_v39, %v1278_v20  ;;  %v3341_v1 = vsel %vm195_vm0, %v1288_v18, %v1263_v32  ;;  %v2716_v32 = vld [vmem:[%s2774_s17 + $0x18] sm:$0xff] }
 0x1c6   : > { %v1320_v30 = vrot.slane %v1243_v16, 4  ;;  %v1323_v47 = vsel %vm195_vm0, %v1243_v16, %v1322_v42  ;;  %v1287_v49 = vperm.slane %v1279_v36, %v2818_v25  ;;  %v1759_v39 = vsel %vm1746_vm10, %v1757_v29, %v1758_v53  ;;  %v2720_v42 = vld [vmem:[%s2774_s17] sm:$0xff] }
 0x1c7   : > { %v1331_v35 = vperm.slane %v1323_v47, %v2785_v5  ;;  %v1277_v51 = vsel %vm195_vm0, %v1276_v46, %v1259_v37  ;;  %v1750_v37 = vrot.slane %v3159_v6, 2  ;;  %v1775_v18 = vrot.slane %v1759_v39, 4 }
 0x1c8   : > { %v1321_v23 = vsel %vm195_vm0, %v1320_v30, %v1235_v63  ;;  %1369 = vrot.lane.b32.xlu0 %v1287_v49, %s2732_s19  ;;  %v1302_v54 = vrot.slane %v1287_v49, 4  ;;  %v3346_v57 = vperm.slane %v1277_v51, %v2818_v25  ;;  %v1760_v46 = vrot.slane %v3141_v56, 2 }
 0x1c9   : > { %v1327_v50 = vperm.slane %v1321_v23, %v2785_v5  ;;  %v1344_v61 = vrot.slane %v1331_v35, 4  ;;  %v3352_v8 = vsel %vm195_vm0, %v1331_v35, %v1346_v52 }
 0x1ca   : > { %v1303_v62 = vsel %vm195_vm0, 0.0, %v1302_v54  ;;  %v1300_v0 = vrot.slane %v3346_v57, 4  ;;  %v1761_v36 = vsel %vm1746_vm10, %v1758_v53, %v1760_v46 }
 0x1cb   : > { %v1332_v31 = vrot.slane %v1327_v50, 4  ;;  %1373 = vrot.lane.b32.xlu1 %v1303_v62, %s2734_s21  ;;  %v3356_v43 = vsel %vm195_vm0, %v1327_v50, %v1334_v45  ;;  %v3359_v44 = vsel %vm195_vm0, %v1344_v61, %v1319_v41  ;;  %v1831_v49 = vrot.slane %v1761_v36, 4 }
 0x1cc   : > { %v1301_v4 = vsel %vm195_vm0, 0.0, %v1300_v0  ;;  %v1343_v54 = vperm.slane %v3356_v43, %v2818_v25  ;;  %v3456_v61 = vperm.slane %v3341_v1, %v2818_v25 }
 0x1cd   : > { %1365 = vrot.lane.b32.xlu2 %v1301_v4, %s2735_s22  ;;  %v3364_v63 = vsel %vm195_vm0, %v1332_v31, %v1315_v40  ;;  %v1747_v40 = vrot.slane %v2720_v42, 2 }
 0x1ce   : > { %v3443_v56 = vperm.slane %v3364_v63, %v2818_v25  ;;  %v1358_v45 = vrot.slane %v1343_v54, 4 }
 0x1d0   : > { %1501 = vrot.lane.b32.xlu0 %v3189_v33, %s2739_s26  ;;  %v1356_v52 = vrot.slane %v3443_v56, 4  ;;  %v1359_v50 = vsel %vm195_vm0, 0.0, %v1358_v45 }
 0x1d2   : > { %v1357_v23 = vsel %vm195_vm0, 0.0, %v1356_v52 }
 0x1d3   : > { %1491 = vrot.lane.b32.xlu1 %v3104_v55, %s2739_s26  ;;  %v1766_v55 = vsel %vm1746_vm10, %v1763_v26, %v1765_v12 }
 0x1d4   : > { %v1843_v33 = vrot.slane %v1766_v55, 4 }
 0x1d5   : > { %1499 = vrot.lane.b32.xlu2 %v3076_v9, %s2739_s26  ;;  %v1764_v9 = vsel %vm1746_vm10, %v1762_v19, %v1763_v26 }
 0x1d6   : > { %v1787_v21 = vrot.slane %v1764_v9, 4  ;;  %v3395_v59 = vsel %vm195_vm0, %v1843_v33, %v1756_v38 }
 0x1d8   : > { %1495 = vrot.lane.b32.xlu0 %v3096_v58, %s2739_s26  ;;  %v1752_v58 = vrot.slane %v2716_v32, 2 }
 0x1da   : > { %v1754_v13 = vsel %vm1746_vm10, %v1752_v58, %v1753_v2 }
 0x1db   : > { %1497 = vrot.lane.b32.xlu1 %v3176_v22, %s2739_s26  ;;  %v2719_v22 = vld [vmem:[%s2774_s17 + $0x8] sm:$0xff]  ;;  %v3398_v14 = vsel %vm195_vm0, %v1787_v21, %v1754_v13  ;;  %v1789_v60 = vrot.slane %v1754_v13, 4 }
 0x1dc   : > { %v1748_v10 = vrot.slane %v2719_v22, 2 }
 0x1dd   : > { %1493 = vrot.lane.b32.xlu2 %v3183_v27, %s2739_s26  ;;  %v1845_v27 = vrot.slane %v1756_v38, 4  ;;  %v3404_v6 = vsel %vm195_vm0, %v1764_v9, %v1789_v60 }
 0x1de   : > { %v1749_v16 = vsel %vm1746_vm10, %v1747_v40, %v1748_v10 }
 0x1df   : > { %v3401_v20 = vsel %vm195_vm0, %v1766_v55, %v1845_v27  ;;  %v3417_v30 = vsel %vm195_vm0, %v1775_v18, %v1749_v16  ;;  %v1777_v47 = vrot.slane %v1749_v16, 4 }
 0x1e0   : > { %1489 = vrot.lane.b32.xlu0 %v3196_v24, %s2739_s26  ;;  %v1751_v24 = vsel %vm1746_vm10, %v1748_v10, %v1750_v37 }
 0x1e1   : > { %v1833_v41 = vrot.slane %v1751_v24, 4  ;;  %v3426_v51 = vsel %vm195_vm0, %v1831_v49, %v1751_v24 }
 0x1e3   : > { %2022 = vrot.lane.b32.xlu1 %v1764_v9, %s2738_s25  ;;  %v3420_v35 = vsel %vm195_vm0, %v1761_v36, %v1833_v41 }
 0x1e5   : > { %1487 = vrot.lane.b32.xlu2 %v3113_v48, %s2739_s26  ;;  %v3423_v48 = vsel %vm195_vm0, %v1759_v39, %v1777_v47 }
 0x1e8   : > { %2014 = vrot.lane.b32.xlu0 %v1754_v13, %s2738_s25 }
 0x1eb   : > { %2016 = vrot.lane.b32.xlu1 %v1756_v38, %s2738_s25 }
 0x1ed   : > { %2024 = vrot.lane.b32.xlu2 %v1766_v55, %s2738_s25 }
 0x1f0   : > { %2020 = vrot.lane.b32.xlu0 %v1761_v36, %s2738_s25 }
 0x1f3   : > { %2010 = vrot.lane.b32.xlu1 %v1749_v16, %s2738_s25 }
 0x1f5   : > { %2018 = vrot.lane.b32.xlu2 %v1759_v39, %s2738_s25 }
 0x1f8   : > { %2281 = vrot.lane.b32.xlu0 %v1764_v9, %s2739_s26 }
 0x1fb   : > { %2283 = vrot.lane.b32.xlu1 %v1766_v55, %s2739_s26 }
 0x1fd   : > { %2012 = vrot.lane.b32.xlu2 %v1751_v24, %s2738_s25 }
 0x200   : > { %2275 = vrot.lane.b32.xlu0 %v1756_v38, %s2739_s26 }
 0x203   : > { %2277 = vrot.lane.b32.xlu1 %v1759_v39, %s2739_s26 }
 0x205   : > { %2273 = vrot.lane.b32.xlu2 %v1754_v13, %s2739_s26 }
 0x208   : > { %2269 = vrot.lane.b32.xlu0 %v1749_v16, %s2739_s26 }
 0x20b   : > { %2271 = vrot.lane.b32.xlu1 %v1751_v24, %s2739_s26 }
 0x20d   : > { %2279 = vrot.lane.b32.xlu2 %v1761_v36, %s2739_s26 }
 0x215   : > { %1393 = vrot.lane.b32.xlu2 %v1357_v23, %s2735_s22 }
 0x21d   : > { %1397 = vrot.lane.b32.xlu2 %v1343_v54, %s2732_s19 }
 0x225   : > { %1401 = vrot.lane.b32.xlu2 %v1359_v50, %s2734_s21 }
 0x227   : > { %v1366_v62 = vpop.permute.xlu2 %1365 }
 0x228   : > { %v1420_v31 = vsel %vm363_vm1, %v3346_v57, %v1366_v62 }
 0x22d   : > { %1377 = vrot.lane.b32.xlu2 %v3456_v61, %s2731_s18 }
 0x22f   : > { %v1500_v0 = vpop.permute.xlu2 %1499 }
 0x230   : > { %v1523_v17 = vrot.slane %v1500_v0, 4 }
 0x237   : > { %v1494_v26 = vpop.permute.xlu2 %1493 }
 0x238   : > { %v1581_v7 = vrot.slane %v1494_v26, 4 }
 0x23a   : > { %v1370_v43 = vpop.permute.xlu0 %1369 }
 0x23b   : > { %v1421_v4 = vsel %vm365_vm2, %v1420_v31, %v1370_v43 }
 0x23d   : > { %v1374_v63 = vpop.permute.xlu1 %1373 }
 0x23e   : > { %v3464_v3 = vsel %vm367_vm3, %v1421_v4, %v1374_v63 }
 0x23f   : > { %v1488_v57 = vpop.permute.xlu2 %1487 }
 0x240   : > { %v1513_v32 = vrot.slane %v1488_v57, 4 }
 0x242   : > { %v1502_v12 = vpop.permute.xlu0 %1501 }
 0x243   : > { %v1579_v9 = vrot.slane %v1502_v12, 4  ;;  %v1582_v10 = vsel %vm195_vm0, %v1502_v12, %v1581_v7 }
 0x244   : > { %v3483_v39 = vperm.slane %v1582_v10, %v2785_v5  ;;  %v1850_v10 = vperm.slane %v3395_v59, %v2785_v5 }
 0x245   : > { %v1492_v1 = vpop.permute.xlu1 %1491  ;;  %v1580_v58 = vsel %vm195_vm0, %v1579_v9, %v1494_v26 }
 0x246   : > { %v1524_v19 = vsel %vm195_vm0, %v1523_v17, %v1492_v1  ;;  %v1525_v55 = vrot.slane %v1492_v1, 4  ;;  %v1586_v38 = vperm.slane %v1580_v58, %v2785_v5  ;;  %v1603_v54 = vrot.slane %v3483_v39, 4 }
 0x247   : > { %v1530_v33 = vperm.slane %v1524_v19, %v2785_v5  ;;  %v1782_v58 = vperm.slane %v3417_v30, %v2785_v5  ;;  %v1299_v30 = vperm.slane %v3331_v15, %v2818_v25  ;;  %v1351_v15 = vperm.slane %v3359_v44, %v2818_v25 }
 0x248   : > { %v1526_v2 = vsel %vm195_vm0, %v1500_v0, %v1525_v55  ;;  %v1591_v16 = vrot.slane %v1586_v38, 4 }
 0x249   : > { %v3472_v34 = vperm.slane %v1526_v2, %v2785_v5  ;;  %v1535_v53 = vrot.slane %v1530_v33, 4 }
 0x24a   : > { %v1496_v21 = vpop.permute.xlu0 %1495 }
 0x24b   : > { %v1511_v28 = vrot.slane %v1496_v21, 4  ;;  %v1514_v13 = vsel %vm195_vm0, %v1496_v21, %v1513_v32  ;;  %v1547_v24 = vrot.slane %v3472_v34, 4 }
 0x24c   : > { %v3487_v41 = vperm.slane %v1514_v13, %v2785_v5  ;;  %v1794_v13 = vperm.slane %v3398_v14, %v2785_v5 }
 0x24d   : > { %v1512_v11 = vsel %vm195_vm0, %v1511_v28, %v1488_v57  ;;  %v1498_v29 = vpop.permute.xlu1 %1497 }
 0x24e   : > { %v1518_v22 = vperm.slane %v1512_v11, %v2785_v5  ;;  %v1567_v37 = vrot.slane %v1498_v29, 4  ;;  %v1548_v0 = vsel %vm195_vm0, %v1547_v24, %v3487_v41 }
 0x24f   : > { %v1554_v26 = vperm.slane %v1548_v0, %v2818_v25 }
 0x250   : > { %v1536_v27 = vsel %vm195_vm0, %v1535_v53, %v1518_v22  ;;  %v1537_v47 = vrot.slane %v1518_v22, 4  ;;  %v1838_v22 = vperm.slane %v3426_v51, %v2785_v5 }
 0x251   : > { %v3480_v60 = vperm.slane %v1536_v27, %v2818_v25  ;;  %v1563_v55 = vrot.slane %v1554_v26, 4  ;;  %v1801_v27 = vrot.slane %v1782_v58, 4 }
 0x252   : > { %v1490_v18 = vpop.permute.xlu0 %1489  ;;  %v1538_v63 = vsel %vm195_vm0, %v1530_v33, %v1537_v47  ;;  %v3521_v33 = vpop.permute.xlu2 %2024 }
 0x253   : > { %v1568_v42 = vsel %vm195_vm0, %v1567_v37, %v1490_v18  ;;  %v1569_v40 = vrot.slane %v1490_v18, 4  ;;  %v1559_v46 = vrot.slane %v3480_v60, 4  ;;  %v1546_v1 = vperm.slane %v1538_v63, %v2818_v25 }
 0x254   : > { %v1574_v36 = vperm.slane %v1568_v42, %v2785_v5  ;;  %v1564_v2 = vsel %vm195_vm0, 0.0, %v1563_v55  ;;  %v1857_v42 = vrot.slane %v1838_v22, 4  ;;  %v1360_v63 = vrot.slane %v1351_v15, 4 }
 0x255   : > { %v1570_v49 = vsel %vm195_vm0, %v1498_v29, %v1569_v40  ;;  %v1560_v52 = vsel %vm195_vm0, 0.0, %v1559_v46  ;;  %v3494_v23 = vpop.permute.xlu1 %2022  ;;  %v1561_v57 = vrot.slane %v1546_v1, 4  ;;  %v1306_v46 = vrot.slane %v1299_v30, 4 }
 0x256   : > { %v1578_v45 = vperm.slane %v1570_v49, %v2785_v5  ;;  %1624 = vrot.lane.b32.xlu0 %v1560_v52, %s2735_s22  ;;  %v1592_v50 = vsel %vm195_vm0, %v1591_v16, %v1574_v36  ;;  %v1593_v12 = vrot.slane %v1574_v36, 4  ;;  %v2046_v11 = vrot.slane %v3494_v23, 4 }
 0x257   : > { %v3501_v62 = vperm.slane %v1592_v50, %v2818_v25  ;;  %v1562_v32 = vsel %vm195_vm0, 0.0, %v1561_v57  ;;  %v1858_v40 = vsel %vm195_vm0, %v1850_v10, %v1857_v42  ;;  %v1802_v36 = vsel %vm195_vm0, %v1794_v13, %v1801_v27 }
 0x258   : > { %v1604_v31 = vsel %vm195_vm0, %v1603_v54, %v1578_v45  ;;  %v1594_v21 = vsel %vm195_vm0, %v1586_v38, %v1593_v12  ;;  %v3547_v38 = vperm.slane %v3352_v8, %v2818_v25  ;;  %v1605_v18 = vrot.slane %v1578_v45, 4 }
 0x259   : > { %v3507_v43 = vperm.slane %v1604_v31, %v2818_v25  ;;  %v1615_v4 = vrot.slane %v3501_v62, 4  ;;  %v1602_v28 = vperm.slane %v1594_v21, %v2818_v25  ;;  %v1799_v49 = vrot.slane %v1794_v13, 4 }
 0x25a   : > { %v3537_v53 = vpop.permute.xlu0 %2014  ;;  %v3543_v37 = vpop.permute.xlu2 %2018  ;;  %v1606_v47 = vsel %vm195_vm0, %v3483_v39, %v1605_v18  ;;  %v1304_v52 = vrot.slane %v3456_v61, 4  ;;  %v1307_v45 = vsel %vm195_vm0, 0.0, %v1306_v46  ;;  %v1361_v55 = vsel %vm195_vm0, 0.0, %v1360_v63 }
 0x25b   : > { %1664 = vrot.lane.b32.xlu2 %v3507_v43, %s2731_s18  ;;  %v1616_v17 = vsel %vm195_vm0, 0.0, %v1615_v4  ;;  %v1617_v29 = vrot.slane %v1602_v28, 4  ;;  %v2034_v24 = vrot.slane %v3543_v37, 4  ;;  %v2047_v51 = vsel %vm195_vm0, %v2046_v11, %v3537_v53 }
 0x25c   : > { %1652 = vrot.lane.b32.xlu1 %v1616_v17, %s2735_s22  ;;  %v3565_v14 = vperm.slane %v2047_v51, %v2785_v5  ;;  %v1614_v50 = vperm.slane %v1606_v47, %v2818_v25  ;;  %v1800_v0 = vsel %vm195_vm0, %v1799_v49, %v1782_v58  ;;  %v1305_v39 = vsel %vm195_vm0, 0.0, %v1304_v52 }
 0x25d   : > { %v3517_v19 = vpop.permute.xlu1 %2016  ;;  %v1618_v59 = vsel %vm195_vm0, 0.0, %v1617_v29  ;;  %v1855_v4 = vrot.slane %v1850_v10, 4  ;;  %v1549_v57 = vrot.slane %v3487_v41, 4  ;;  %v3611_v11 = vperm.slane %v3401_v20, %v2785_v5 }
 0x25e   : > { %1628 = vrot.lane.b32.xlu0 %v1546_v1, %s2732_s19  ;;  %v2104_v9 = vrot.slane %v3517_v19, 4  ;;  %v2058_v44 = vrot.slane %v3565_v14, 4  ;;  %v1621_v31 = vrot.slane %v1614_v50, 4  ;;  %v1619_v1 = vrot.slane %v3507_v43, 4 }
 0x25f   : > { %v1550_v58 = vsel %vm195_vm0, %v3472_v34, %v1549_v57  ;;  %v2102_v29 = vrot.slane %v3521_v33, 4  ;;  %v1867_v20 = vrot.slane %v3611_v11, 4  ;;  %v3631_v27 = vperm.slane %v1858_v40, %v2818_v25 }
 0x260   : > { %v3526_v7 = vsel %vm195_vm0, %v3521_v33, %v2104_v9  ;;  %v1856_v9 = vsel %vm195_vm0, %v1855_v4, %v1838_v22  ;;  %v3619_v22 = vperm.slane %v3420_v35, %v2785_v5  ;;  %v1558_v10 = vperm.slane %v1550_v58, %v2818_v25 }
 0x261   : > { %v2103_v33 = vsel %vm195_vm0, %v2102_v29, %v3517_v19  ;;  %v1810_v35 = vperm.slane %v1802_v36, %v2818_v25  ;;  %v1786_v51 = vperm.slane %v3423_v48, %v2785_v5  ;;  %v3643_v19 = vperm.slane %v1800_v0, %v2818_v25 }
 0x262   : > { %v3591_v17 = vpop.permute.xlu2 %2012  ;;  %v2109_v18 = vperm.slane %v2103_v33, %v2785_v5  ;;  %v1798_v48 = vperm.slane %v3404_v6, %v2785_v5  ;;  %v1565_v36 = vrot.slane %v1558_v10, 4 }
 0x263   : > { %1640 = vrot.lane.b32.xlu2 %v1564_v2, %s2737_s24  ;;  %v1620_v2 = vsel %vm195_vm0, 0.0, %v1619_v1  ;;  %v1825_v42 = vrot.slane %v1810_v35, 4  ;;  %v1813_v46 = vrot.slane %v1786_v51, 4  ;;  %v1823_v47 = vrot.slane %v3643_v19, 4 }
 0x264   : > { %1656 = vrot.lane.b32.xlu1 %v1602_v28, %s2732_s19  ;;  %v3602_v28 = vpop.permute.xlu0 %2020  ;;  %v1811_v63 = vrot.slane %v1798_v48, 4 }
 0x265   : > { %v3559_v8 = vpop.permute.xlu1 %2010  ;;  %v1826_v52 = vsel %vm195_vm0, 0.0, %v1825_v42 }
 0x266   : > { %1632 = vrot.lane.b32.xlu0 %v1562_v32, %s2734_s21  ;;  %v2035_v16 = vsel %vm195_vm0, %v2034_v24, %v3559_v8  ;;  %v2090_v32 = vrot.slane %v3602_v28, 4  ;;  %v1362_v24 = vrot.slane %v3547_v38, 4 }
 0x267   : > { %v3577_v54 = vperm.slane %v2035_v16, %v2785_v5  ;;  %v2048_v16 = vrot.slane %v3537_v53, 4  ;;  %v1566_v53 = vsel %vm195_vm0, 0.0, %v1565_v36 }
 0x268   : > { %v2091_v34 = vsel %vm195_vm0, %v2090_v32, %v3591_v17  ;;  %v1363_v40 = vsel %vm195_vm0, 0.0, %v1362_v24 }
 0x269   : > { %v2059_v61 = vsel %vm195_vm0, %v2058_v44, %v3577_v54  ;;  %v2097_v13 = vperm.slane %v2091_v34, %v2785_v5  ;;  %v1814_v44 = vsel %vm195_vm0, %v1798_v48, %v1813_v46  ;;  %v2049_v6 = vsel %vm195_vm0, %v3494_v23, %v2048_v16 }
 0x26a   : > { %v3589_v12 = vperm.slane %v2059_v61, %v2818_v25  ;;  %v3614_v41 = vpop.permute.xlu2 %2273  ;;  %v2036_v61 = vrot.slane %v3559_v8, 4  ;;  %v2057_v1 = vperm.slane %v2049_v6, %v2785_v5  ;;  %v2060_v32 = vrot.slane %v3577_v54, 4 }
 0x26b   : > { %1413 = vrot.lane.b32.xlu2 %v3547_v38, %s2733_s20  ;;  %v2114_v38 = vrot.slane %v2109_v18, 4  ;;  %v2113_v48 = vperm.slane %v3526_v7, %v2785_v5 }
 0x26c   : > { %1660 = vrot.lane.b32.xlu1 %v1618_v59, %s2734_s21  ;;  %v2082_v21 = vrot.slane %v3589_v12, 4  ;;  %v2116_v59 = vrot.slane %v2097_v13, 4  ;;  %v2070_v57 = vrot.slane %v2057_v1, 4  ;;  %v3706_v24 = vpop.permute.xlu0 %2281 }
 0x26d   : > { %v2115_v0 = vsel %vm195_vm0, %v2114_v38, %v2097_v13  ;;  %v3702_v13 = vpop.permute.xlu1 %2283 }
 0x26e   : > { %1405 = vrot.lane.b32.xlu0 %v1351_v15, %s2731_s18  ;;  %v2083_v43 = vsel %vm195_vm0, 0.0, %v2082_v21  ;;  %v2117_v49 = vsel %vm195_vm0, %v2109_v18, %v2116_v59  ;;  %v3671_v4 = vperm.slane %v2115_v0, %v2818_v25  ;;  %v1869_v18 = vrot.slane %v3619_v22, 4 }
 0x270   : > { %v2138_v21 = vrot.slane %v3671_v4, 4  ;;  %v1870_v38 = vsel %vm195_vm0, %v3611_v11, %v1869_v18  ;;  %v2126_v11 = vrot.slane %v2113_v48, 4 }
 0x272   : > { %v3646_v15 = vpop.permute.xlu2 %2279  ;;  %v2139_v58 = vsel %vm195_vm0, 0.0, %v2138_v21 }
 0x273   : > { %1389 = vrot.lane.b32.xlu2 %v1307_v45, %s2736_s23  ;;  %v3658_v45 = vperm.slane %v1856_v9, %v2818_v25  ;;  %v2037_v9 = vsel %vm195_vm0, %v3543_v37, %v2036_v61 }
 0x274   : > { %1636 = vrot.lane.b32.xlu1 %v1554_v26, %s2731_s18  ;;  %v1622_v26 = vsel %vm195_vm0, 0.0, %v1621_v31  ;;  %v2276_v46 = vpop.permute.xlu0 %2275 }
 0x275   : > { %v1879_v31 = vrot.slane %v3658_v45, 4 }
 0x276   : > { %1381 = vrot.lane.b32.xlu0 %v1305_v39, %s2737_s24  ;;  %v1824_v39 = vsel %vm195_vm0, 0.0, %v1823_v47 }
 0x277   : > { %v1880_v8 = vsel %vm195_vm0, 0.0, %v1879_v31 }
 0x27b   : > { %1676 = vrot.lane.b32.xlu2 %v1622_v26, %s2736_s23  ;;  %v3675_v26 = vpop.permute.xlu2 %1393 }
 0x27c   : > { %1409 = vrot.lane.b32.xlu1 %v1361_v55, %s2737_s24  ;;  %v1812_v55 = vsel %vm195_vm0, %v1811_v63, %v1786_v51  ;;  %v1881_v51 = vrot.slane %v3631_v27, 4 }
 0x27d   : > { %v1818_v36 = vperm.slane %v1812_v55, %v2818_v25 }
 0x27e   : > { %1668 = vrot.lane.b32.xlu0 %v1620_v2, %s2737_s24  ;;  %v1882_v42 = vsel %vm195_vm0, 0.0, %v1881_v51 }
 0x283   : > { %2147 = vrot.lane.b32.xlu2 %v2083_v43, %s2735_s22  ;;  %v2045_v43 = vperm.slane %v2037_v9, %v2785_v5  ;;  %v2270_v9 = vpop.permute.xlu0 %2269 }
 0x284   : > { %1385 = vrot.lane.b32.xlu1 %v1299_v30, %s2733_s20  ;;  %v1868_v30 = vsel %vm195_vm0, %v1867_v20, %v3619_v22  ;;  %v2061_v20 = vsel %vm195_vm0, %v3565_v14, %v2060_v32 }
 0x285   : > { %v2071_v37 = vsel %vm195_vm0, %v2070_v57, %v2045_v43  ;;  %v1874_v29 = vperm.slane %v1868_v30, %v2818_v25  ;;  %v2069_v54 = vperm.slane %v2061_v20, %v2818_v25  ;;  %v2092_v30 = vrot.slane %v3591_v17, 4 }
 0x286   : > { %1644 = vrot.lane.b32.xlu0 %v1558_v10, %s2733_s20  ;;  %v3691_v10 = vpop.permute.xlu2 %1397  ;;  %v3694_v34 = vperm.slane %v2071_v37, %v2818_v25  ;;  %v2072_v47 = vrot.slane %v2045_v43, 4  ;;  %v1827_v43 = vrot.slane %v1818_v36, 4 }
 0x287   : > { %v1883_v33 = vrot.slane %v1874_v29, 4  ;;  %v2084_v22 = vrot.slane %v2069_v54, 4 }
 0x288   : > { %v2073_v6 = vsel %vm195_vm0, %v2057_v1, %v2072_v47  ;;  %v2305_v1 = vrot.slane %v3706_v24, 4 }
 0x289   : > { %v1884_v14 = vsel %vm195_vm0, 0.0, %v1883_v33 }
 0x28a   : > { %v2306_v20 = vsel %vm195_vm0, %v2305_v1, %v3614_v41 }
 0x28b   : > { %1920 = vrot.lane.b32.xlu2 %v3631_v27, %s2732_s19  ;;  %v3720_v27 = vpop.permute.xlu1 %2277  ;;  %v2312_v51 = vperm.slane %v2306_v20, %v2785_v5 }
 0x28c   : > { %1672 = vrot.lane.b32.xlu1 %v1614_v50, %s2733_s20  ;;  %v2125_v50 = vperm.slane %v2117_v49, %v2818_v25  ;;  %v2085_v49 = vsel %vm195_vm0, 0.0, %v2084_v22 }
 0x28e   : > { %1417 = vrot.lane.b32.xlu0 %v1363_v40, %s2736_s23  ;;  %v2140_v23 = vrot.slane %v2125_v50, 4  ;;  %v3711_v59 = vpop.permute.xlu2 %1401  ;;  %v3723_v40 = vperm.slane %v1814_v44, %v2818_v25 }
 0x290   : > { %v2141_v2 = vsel %vm195_vm0, 0.0, %v2140_v23  ;;  %v2081_v23 = vperm.slane %v2073_v6, %v2818_v25 }
 0x292   : > { %v2088_v32 = vrot.slane %v2081_v23, 4 }
 0x293   : > { %1896 = vrot.lane.b32.xlu2 %v1826_v52, %s2734_s21  ;;  %v2272_v61 = vpop.permute.xlu1 %2271 }
 0x294   : > { %1648 = vrot.lane.b32.xlu1 %v1566_v53, %s2736_s23  ;;  %v2293_v53 = vrot.slane %v3720_v27, 4  ;;  %v2089_v33 = vsel %vm195_vm0, 0.0, %v2088_v32 }
 0x296   : > { %1888 = vrot.lane.b32.xlu0 %v1824_v39, %s2735_s22  ;;  %v3736_v44 = vpop.permute.xlu2 %1377 }
 0x29b   : > { %2183 = vrot.lane.b32.xlu2 %v2141_v2, %s2734_s21 }
 0x29c   : > { %1916 = vrot.lane.b32.xlu1 %v1880_v8, %s2735_s22  ;;  %v2294_v8 = vsel %vm195_vm0, %v2293_v53, %v2270_v9 }
 0x29e   : > { %2175 = vrot.lane.b32.xlu0 %v2139_v58, %s2735_s22  ;;  %v2300_v58 = vperm.slane %v2294_v8, %v2785_v5 }
 0x2a3   : > { %2159 = vrot.lane.b32.xlu2 %v3694_v34, %s2731_s18 }
 0x2a4   : > { %1892 = vrot.lane.b32.xlu1 %v1810_v35, %s2732_s19  ;;  %v2093_v35 = vsel %vm195_vm0, %v3602_v28, %v2092_v30  ;;  %v2361_v28 = vrot.slane %v3702_v13, 4 }
 0x2a5   : > { %v2101_v17 = vperm.slane %v2093_v35, %v2785_v5 }
 0x2a6   : > { %2151 = vrot.lane.b32.xlu0 %v2069_v54, %s2732_s19  ;;  %v2362_v52 = vsel %vm195_vm0, %v2361_v28, %v2276_v46  ;;  %v2086_v54 = vrot.slane %v3694_v34, 4 }
 0x2a7   : > { %v2128_v16 = vrot.slane %v2101_v17, 4  ;;  %v3742_v0 = vperm.slane %v2362_v52, %v2785_v5  ;;  %v2127_v39 = vsel %vm195_vm0, %v2126_v11, %v2101_v17 }
 0x2a8   : > { %v2133_v21 = vperm.slane %v2127_v39, %v2818_v25  ;;  %v2087_v18 = vsel %vm195_vm0, 0.0, %v2086_v54 }
 0x2a9   : > { %v2129_v7 = vsel %vm195_vm0, %v2113_v48, %v2128_v16  ;;  %v2373_v55 = vrot.slane %v3742_v0, 4  ;;  %v1878_v16 = vperm.slane %v1870_v38, %v2818_v25 }
 0x2aa   : > { %v3748_v31 = vperm.slane %v2129_v7, %v2818_v25  ;;  %v2142_v17 = vrot.slane %v2133_v21, 4  ;;  %v1829_v7 = vrot.slane %v3723_v40, 4 }
 0x2ab   : > { %1932 = vrot.lane.b32.xlu2 %v1884_v14, %s2737_s24  ;;  %v2319_v14 = vrot.slane %v2300_v58, 4 }
 0x2ac   : > { %2179 = vrot.lane.b32.xlu1 %v2125_v50, %s2732_s19  ;;  %v2349_v50 = vrot.slane %v3646_v15, 4  ;;  %v2144_v20 = vrot.slane %v3748_v31, 4 }
 0x2ad   : > { %v2320_v22 = vsel %vm195_vm0, %v2312_v51, %v2319_v14 }
 0x2ae   : > { %1924 = vrot.lane.b32.xlu0 %v1882_v42, %s2734_s21  ;;  %v2350_v63 = vsel %vm195_vm0, %v2349_v50, %v2272_v61  ;;  %v2363_v42 = vrot.slane %v2276_v46, 4  ;;  %v2143_v46 = vsel %vm195_vm0, 0.0, %v2142_v17  ;;  %v2295_v50 = vrot.slane %v2270_v9, 4 }
 0x2af   : > { %v3760_v57 = vperm.slane %v2350_v63, %v2785_v5  ;;  %v2307_v63 = vrot.slane %v3614_v41, 4  ;;  %v1830_v9 = vsel %vm195_vm0, 0.0, %v1829_v7 }
 0x2b0   : > { %v2364_v47 = vsel %vm195_vm0, %v3702_v13, %v2363_v42 }
 0x2b1   : > { %v2374_v37 = vsel %vm195_vm0, %v2373_v55, %v3760_v57  ;;  %v2372_v52 = vperm.slane %v2364_v47, %v2785_v5  ;;  %v2296_v55 = vsel %vm195_vm0, %v3720_v27, %v2295_v50  ;;  %v2308_v27 = vsel %vm195_vm0, %v3706_v24, %v2307_v63 }
 0x2b2   : > { %v3774_v30 = vperm.slane %v2374_v37, %v2818_v25  ;;  %v2304_v8 = vperm.slane %v2296_v55, %v2785_v5  ;;  %v2316_v54 = vperm.slane %v2308_v27, %v2785_v5  ;;  %v2375_v14 = vrot.slane %v3760_v57, 4 }
 0x2b3   : > { %1908 = vrot.lane.b32.xlu2 %v3723_v40, %s2733_s20  ;;  %v2385_v39 = vrot.slane %v2372_v52, 4  ;;  %v2317_v40 = vrot.slane %v2312_v51, 4 }
 0x2b4   : > { %2155 = vrot.lane.b32.xlu1 %v2085_v49, %s2734_s21  ;;  %v2397_v35 = vrot.slane %v3774_v30, 4  ;;  %v2351_v49 = vrot.slane %v2272_v61, 4  ;;  %v2376_v57 = vsel %vm195_vm0, %v3742_v0, %v2375_v14 }
 0x2b5   : > { %v3762_v2 = vpop.permute.xlu2 %1664 }
 0x2b6   : > { %1900 = vrot.lane.b32.xlu0 %v1818_v36, %s2731_s18  ;;  %v2398_v48 = vsel %vm195_vm0, 0.0, %v2397_v35  ;;  %v3790_v36 = vperm.slane %v2320_v22, %v2818_v25  ;;  %v2352_v13 = vsel %vm195_vm0, %v3646_v15, %v2351_v49  ;;  %v1885_v15 = vrot.slane %v1878_v16, 4 }
 0x2b7   : > { %v2360_v1 = vperm.slane %v2352_v13, %v2785_v5  ;;  %v2384_v49 = vperm.slane %v2376_v57, %v2818_v25 }
 0x2b8   : > { %v2343_v38 = vrot.slane %v3790_v36, 4 }
 0x2b9   : > { %v2386_v41 = vsel %vm195_vm0, %v2385_v39, %v2360_v1  ;;  %v2387_v24 = vrot.slane %v2360_v1, 4  ;;  %v2399_v7 = vrot.slane %v2384_v49, 4  ;;  %v1423_v1 = vsel %vm369_vm4, %v3464_v3, %v3736_v44 }
 0x2ba   : > { %v2344_v61 = vsel %vm195_vm0, 0.0, %v2343_v38  ;;  %v3828_v37 = vperm.slane %v2386_v41, %v2818_v25  ;;  %v1427_v3 = vsel %vm363_vm1, %v3443_v56, %v3675_v26 }
 0x2bb   : > { %2195 = vrot.lane.b32.xlu2 %v3748_v31, %s2733_s20  ;;  %v2145_v31 = vsel %vm195_vm0, 0.0, %v2144_v20  ;;  %v2388_v42 = vsel %vm195_vm0, %v2372_v52, %v2387_v24  ;;  %v2329_v52 = vrot.slane %v2316_v54, 4 }
 0x2bc   : > { %1928 = vrot.lane.b32.xlu1 %v1874_v29, %s2731_s18  ;;  %v1828_v29 = vsel %vm195_vm0, 0.0, %v1827_v43  ;;  %v2318_v43 = vsel %vm195_vm0, %v2317_v40, %v2300_v58  ;;  %v2401_v27 = vrot.slane %v3828_v37, 4 }
 0x2bd   : > { %v3782_v34 = vpop.permute.xlu2 %1640  ;;  %v3841_v51 = vperm.slane %v2318_v43, %v2818_v25  ;;  %v2330_v39 = vsel %vm195_vm0, %v2329_v52, %v2304_v8 }
 0x2be   : > { %2187 = vrot.lane.b32.xlu0 %v2133_v21, %s2731_s18  ;;  %v2336_v63 = vperm.slane %v2330_v39, %v2818_v25 }
 0x2bf   : > { %v2341_v35 = vrot.slane %v3841_v51, 4 }
 0x2c0   : > { %v2345_v40 = vrot.slane %v2336_v63, 4 }
 0x2c1   : > { %v2342_v47 = vsel %vm195_vm0, 0.0, %v2341_v35 }
 0x2c3   : > { %2171 = vrot.lane.b32.xlu2 %v2089_v33, %s2736_s23  ;;  %v2331_v33 = vrot.slane %v2304_v8, 4 }
 0x2c4   : > { %1904 = vrot.lane.b32.xlu1 %v1828_v29, %s2737_s24  ;;  %v2646_v29 = vld [vmem:[%s4037_s1 + $0x8] sm:$0xff] }
 0x2c5   : > { %v3807_v53 = vpop.permute.xlu2 %1413  ;;  %2648 = vmatmul.msk.f32.vlgmr.msra.gmra.mxu0 %vm601_vm11, %v2646_v29  ;;  %2650 = vmatmul.msk.f32.vlgmr.msra.gmra.mxu1 %vm601_vm11, %v2646_v29 }
 0x2c6   : > { %2163 = vrot.lane.b32.xlu0 %v2087_v18, %s2737_s24  ;;  %v2332_v18 = vsel %vm195_vm0, %v2316_v54, %v2331_v33 }
 0x2c7   : > { %v3851_v22 = vperm.slane %v2332_v18, %v2818_v25 }
 0x2c8   : > { %v3785_v28 = vpop.permute.xlu0 %1624 }
 0x2cb   : > { %2434 = vrot.lane.b32.xlu2 %v2398_v48, %s2735_s22  ;;  %v384_v48 = vld [vmem:[%s4037_s1] sm:$0xff] }
 0x2cc   : > { %2191 = vrot.lane.b32.xlu1 %v2143_v46, %s2737_s24  ;;  %2654 = vmatmul.msk.f32.vlgmr.msra.gmra.mxu3 %vm601_vm11, %v384_v48 }
 0x2cd   : > { %v1390_v58 = vpop.permute.xlu2 %1389  ;;  %2652 = vmatmul.msk.f32.vlgmr.msra.gmra.mxu2 %vm601_vm11, %v384_v48 }
 0x2ce   : > { %v3798_v11 = vpop.permute.xlu1 %1652  ;;  %1936 = vrot.lane.b32.xlu0 %v1878_v16, %s2733_s20  ;;  %v2396_v16 = vperm.slane %v2388_v42, %v2818_v25 }
 0x2cf   : > { %v1686_v43 = vsel %vm363_vm1, %v3501_v62, %v3798_v11  ;;  %v2402_v11 = vsel %vm195_vm0, 0.0, %v2401_v27 }
 0x2d0   : > { %v3803_v6 = vpop.permute.xlu0 %1628  ;;  %v2403_v0 = vrot.slane %v2396_v16, 4 }
 0x2d2   : > { %v2404_v13 = vsel %vm195_vm0, 0.0, %v2403_v0 }
 0x2d3   : > { %2414 = vrot.lane.b32.xlu2 %v2344_v61, %s2734_s21  ;;  %v2400_v61 = vsel %vm195_vm0, 0.0, %v2399_v7 }
 0x2d4   : > { %2167 = vrot.lane.b32.xlu1 %v2081_v23, %s2733_s20  ;;  %v1886_v23 = vsel %vm195_vm0, 0.0, %v1885_v15  ;;  %v2346_v15 = vsel %vm195_vm0, 0.0, %v2345_v40 }
 0x2d5   : > { %v1677_v46 = vpop.permute.xlu2 %1676 }
 0x2d6   : > { %v3818_v21 = vpop.permute.xlu1 %1656  ;;  %1912 = vrot.lane.b32.xlu0 %v1830_v9, %s2736_s23 }
 0x2d7   : > { %v1687_v44 = vsel %vm365_vm2, %v1686_v43, %v3818_v21 }
 0x2d8   : > { %v3825_v32 = vpop.permute.xlu0 %1632 }
 0x2db   : > { %2446 = vrot.lane.b32.xlu2 %v3828_v37, %s2731_s18  ;;  %v1428_v37 = vsel %vm365_vm2, %v1427_v3, %v3691_v10  ;;  %v1679_v10 = vsel %vm363_vm1, %v3480_v60, %v3785_v28 }
 0x2dc   : > { %1940 = vrot.lane.b32.xlu1 %v1886_v23, %s2736_s23  ;;  %v1429_v62 = vsel %vm367_vm3, %v1428_v37, %v3711_v59 }
 0x2dd   : > { %v3875_v9 = vpop.permute.xlu2 %2147 }
 0x2de   : > { %v1661_v5 = vpop.permute.xlu1 %1660  ;;  %2199 = vrot.lane.b32.xlu0 %v2145_v31, %s2736_s23  ;;  %v1680_v31 = vsel %vm365_vm2, %v1679_v10, %v3803_v6 }
 0x2df   : > { %v1688_v54 = vsel %vm367_vm3, %v1687_v44, %v1661_v5  ;;  %v1681_v18 = vsel %vm367_vm3, %v1680_v31, %v3825_v32  ;;  %v2675_v31 = vld [vmem:[%s4037_s1 + $0x30] sm:$0xff] }
 0x2e0   : > { %v1406_v17 = vpop.permute.xlu0 %1405  ;;  %v1689_v26 = vsel %vm369_vm4, %v1688_v54, %v3762_v2 }
 0x2e1   : > { %v1430_v33 = vsel %vm369_vm4, %v1429_v62, %v1406_v17 }
 0x2e3   : > { %2426 = vrot.lane.b32.xlu2 %v3851_v22, %s2733_s20 }
 0x2e4   : > { %2406 = vrot.lane.b32.xlu1 %v2342_v47, %s2735_s22 }
 0x2e5   : > { %v3895_v29 = vpop.permute.xlu2 %1920 }
 0x2e6   : > { %v1637_v38 = vpop.permute.xlu1 %1636  ;;  %2410 = vrot.lane.b32.xlu0 %v3790_v36, %s2732_s19 }
 0x2e7   : > { %v1682_v60 = vsel %vm369_vm4, %v1681_v18, %v1637_v38 }
 0x2e8   : > { %v1382_v50 = vpop.permute.xlu0 %1381  ;;  %v1683_v42 = vsel %vm371_vm5, %v1682_v60, %v3782_v34  ;;  %v2660_v34 = vld [vmem:[%s4037_s1 + $0x18] sm:$0xff] }
 0x2e9   : > { %v1424_v8 = vsel %vm371_vm5, %v1423_v1, %v1382_v50  ;;  %2662 = vmatmul.msk.f32.vlgmr.msrb.gmra.mxu2 %vm601_vm11, %v2660_v34  ;;  %2664 = vmatmul.msk.f32.vlgmr.msrb.gmra.mxu3 %vm601_vm11, %v2660_v34  ;;  %v2670_v1 = vld [vmem:[%s4037_s1 + $0x28] sm:$0xff] }
 0x2eb   : > { %2458 = vrot.lane.b32.xlu2 %v2404_v13, %s2736_s23  ;;  %v2655_v13 = vld [vmem:[%s4037_s1 + $0x10] sm:$0xff] }
 0x2ec   : > { %2438 = vrot.lane.b32.xlu1 %v2384_v49, %s2732_s19  ;;  %2657 = vmatmul.msk.f32.vlgmr.msrb.gmra.mxu0 %vm601_vm11, %v2655_v13 }
 0x2ed   : > { %v1897_v28 = vpop.permute.xlu2 %1896  ;;  %2659 = vmatmul.msk.f32.vlgmr.msrb.gmra.mxu1 %vm601_vm11, %v2655_v13 }
 0x2ee   : > { %v1410_v55 = vpop.permute.xlu1 %1409  ;;  %2442 = vrot.lane.b32.xlu0 %v2400_v61, %s2734_s21 }
 0x2ef   : > { %v1431_v56 = vsel %vm371_vm5, %v1430_v33, %v1410_v55 }
 0x2f0   : > { %v1669_v36 = vpop.permute.xlu0 %1668  ;;  %v1432_v2 = vsel %vm373_vm6, %v1431_v56, %v3807_v53  ;;  %v2680_v56 = vld [vmem:[%s4037_s1 + $0x38] sm:$0xff] }
 0x2f1   : > { %v1690_v21 = vsel %vm371_vm5, %v1689_v26, %v1669_v36 }
 0x2f4   : > { %2418 = vrot.lane.b32.xlu1 %v2336_v63, %s2731_s18 }
 0x2f5   : > { %v2184_v48 = vpop.permute.xlu2 %2183 }
 0x2f6   : > { %v1386_v41 = vpop.permute.xlu1 %1385  ;;  %2422 = vrot.lane.b32.xlu0 %v2346_v15, %s2737_s24 }
 0x2f7   : > { %v1425_v25 = vsel %vm373_vm6, %v1424_v8, %v1386_v41 }
 0x2f8   : > { %v1426_v23 = vsel %vm375_vm7, %v1425_v25, %v1390_v58  ;;  %v1645_v20 = vpop.permute.xlu0 %1644  ;;  %v2347_v58 = vrot.slane %v3851_v22, 4  ;;  %v2202_v25 = vsel %vm363_vm1, %v3589_v12, %v3875_v9 }
 0x2f9   : > { %2666 = vmatpush.msk.msra.mxu0 %vm605_vm8, %v1426_v23  ;;  %v1684_v53 = vsel %vm373_vm6, %v1683_v42, %v1645_v20  ;;  %v2665_v20 = vld [vmem:[%s4037_s1 + $0x20] sm:$0xff] }
 0x2fa   : > { %v2348_v6 = vsel %vm195_vm0, 0.0, %v2347_v58  ;;  %2667 = vmatmul.msk.f32.vlgmr.msra.gmra.mxu0 %vm601_vm11, %v2665_v20 }
 0x2fc   : > { %2450 = vrot.lane.b32.xlu1 %v2402_v11, %s2737_s24  ;;  %s2645_s24 = sshll.u32 %s4041_s13, 1 }
 0x2fd   : > { %s181_s27 = scalar_lea.vmem %s4039_s3, %s2645_s24 }
 0x2fe   : > { %v1673_v24 = vpop.permute.xlu1 %1672  ;;  %2454 = vrot.lane.b32.xlu0 %v2396_v16, %s2733_s20  ;;  %s2692_s20 = sshll.u32 %s4041_s13, 4 }
 0x2ff   : > { %v1691_v59 = vsel %vm373_vm6, %v1690_v21, %v1673_v24 }
 0x300   : > { %v1692_v14 = vsel %vm375_vm7, %v1691_v59, %v1677_v46  ;;  %v1418_v5 = vpop.permute.xlu0 %1417  ;;  %v2160_v46 = vpop.permute.xlu2 %2159 }
 0x301   : > { %v1433_v35 = vsel %vm375_vm7, %v1432_v2, %v1418_v5  ;;  %2673 = vmatpush.msk.msra.mxu3 %vm605_vm8, %v1692_v14 }
 0x302   : > { %2668 = vmatpush.msk.msra.mxu1 %vm605_vm8, %v1433_v35  ;;  %2674 = vmatmul.msk.f32.vlgmr.msra.gmra.mxu3 %vm601_vm11, %v2670_v1 }
 0x303   : > { %2669 = vmatmul.msk.f32.vlgmr.msra.gmra.mxu1 %vm601_vm11, %v2665_v20 }
 0x304   : > { %2430 = vrot.lane.b32.xlu1 %v2348_v6, %s2736_s23  ;;  %s177_s23 = scalar_lea.vmem %s4038_s2, %s2692_s20 }
 0x306   : > { %v1649_v17 = vpop.permute.xlu1 %1648 }
 0x307   : > { %v1685_v32 = vsel %vm375_vm7, %v1684_v53, %v1649_v17 }
 0x308   : > { %v1889_v22 = vpop.permute.xlu0 %1888  ;;  %2671 = vmatpush.msk.msra.mxu2 %vm605_vm8, %v1685_v32  ;;  %v1933_v0 = vpop.permute.xlu2 %1932 }
 0x309   : > { %2672 = vmatmul.msk.f32.vlgmr.msra.gmra.mxu2 %vm601_vm11, %v2670_v1  ;;  %v1943_v8 = vsel %vm363_vm1, %v3643_v19, %v1889_v22 }
 0x30e   : > { %v1917_v16 = vpop.permute.xlu1 %1916 }
 0x30f   : > { %v1950_v12 = vsel %vm363_vm1, %v3658_v45, %v1917_v16 }
 0x310   : > { %v2176_v57 = vpop.permute.xlu0 %2175  ;;  %v1909_v39 = vpop.permute.xlu2 %1908  ;;  %v1951_v45 = vsel %vm365_vm2, %v1950_v12, %v3895_v29 }
 0x311   : > { %v2209_v11 = vsel %vm363_vm1, %v3671_v4, %v2176_v57 }
 0x316   : > { %v1893_v47 = vpop.permute.xlu1 %1892 }
 0x317   : > { %v1944_v27 = vsel %vm365_vm2, %v1943_v8, %v1893_v47 }
 0x318   : > { %v2152_v49 = vpop.permute.xlu0 %2151  ;;  %v2196_v55 = vpop.permute.xlu2 %2195  ;;  %v1945_v19 = vsel %vm367_vm3, %v1944_v27, %v1897_v28 }
 0x319   : > { %v2203_v23 = vsel %vm365_vm2, %v2202_v25, %v2152_v49 }
 0x31e   : > { %v2180_v52 = vpop.permute.xlu1 %2179 }
 0x31f   : > { %v2210_v26 = vsel %vm365_vm2, %v2209_v11, %v2180_v52 }
 0x320   : > { %v1925_v38 = vpop.permute.xlu0 %1924  ;;  %v2172_v41 = vpop.permute.xlu2 %2171  ;;  %v2211_v29 = vsel %vm367_vm3, %v2210_v26, %v2184_v48 }
 0x321   : > { %v1952_v59 = vsel %vm367_vm3, %v1951_v45, %v1925_v38 }
 0x326   : > { %v2156_v50 = vpop.permute.xlu1 %2155 }
 0x327   : > { %v2204_v3 = vsel %vm367_vm3, %v2203_v23, %v2156_v50 }
 0x328   : > { %v1901_v7 = vpop.permute.xlu0 %1900  ;;  %v2205_v37 = vsel %vm369_vm4, %v2204_v3, %v2160_v46  ;;  %v2435_v58 = vpop.permute.xlu2 %2434 }
 0x329   : > { %v1946_v44 = vsel %vm369_vm4, %v1945_v19, %v1901_v7  ;;  %v2468_v46 = vsel %vm363_vm1, %v3774_v30, %v2435_v58 }
 0x32e   : > { %v1929_v61 = vpop.permute.xlu1 %1928 }
 0x32f   : > { %v1953_v14 = vsel %vm369_vm4, %v1952_v59, %v1929_v61 }
 0x330   : > { %v2188_v63 = vpop.permute.xlu0 %2187  ;;  %v1954_v18 = vsel %vm371_vm5, %v1953_v14, %v1933_v0  ;;  %v2415_v17 = vpop.permute.xlu2 %2414 }
 0x331   : > { %v2212_v5 = vsel %vm369_vm4, %v2211_v29, %v2188_v63 }
 0x336   : > { %v1905_v36 = vpop.permute.xlu1 %1904 }
 0x337   : > { %v1947_v9 = vsel %vm371_vm5, %v1946_v44, %v1905_v36 }
 0x338   : > { %v2164_v40 = vpop.permute.xlu0 %2163  ;;  %v1948_v10 = vsel %vm373_vm6, %v1947_v9, %v1909_v39  ;;  %v2447_v48 = vpop.permute.xlu2 %2446 }
 0x339   : > { %v2206_v54 = vsel %vm371_vm5, %v2205_v37, %v2164_v40 }
 0x33e   : > { %v2192_v15 = vpop.permute.xlu1 %2191 }
 0x33f   : > { %v2213_v2 = vsel %vm371_vm5, %v2212_v5, %v2192_v15 }
 0x340   : > { %v1937_v43 = vpop.permute.xlu0 %1936  ;;  %v2214_v42 = vsel %vm373_vm6, %v2213_v2, %v2196_v55  ;;  %v2427_v49 = vpop.permute.xlu2 %2426 }
 0x341   : > { %v1955_v35 = vsel %vm373_vm6, %v1954_v18, %v1937_v43 }
 0x342   : > { %v649_v25 = vpop.f32.mrf.mxu1  ;;  %v629_v43 = vpop.f32.mrf.mxu0 }
 0x346   : > { %v2168_v62 = vpop.permute.xlu1 %2167 }
 0x347   : > { %v2207_v33 = vsel %vm373_vm6, %v2206_v54, %v2168_v62 }
 0x348   : > { %v2208_v21 = vsel %vm375_vm7, %v2207_v33, %v2172_v41  ;;  %v1913_v24 = vpop.permute.xlu0 %1912  ;;  %v2459_v55 = vpop.permute.xlu2 %2458 }
 0x349   : > { %v1949_v4 = vsel %vm375_vm7, %v1948_v10, %v1913_v24  ;;  %2681 = vmatpush.msk.msrb.mxu2 %vm605_vm8, %v2208_v21 }
 0x34a   : > { %2676 = vmatpush.msk.msrb.mxu0 %vm605_vm8, %v1949_v4  ;;  %2682 = vmatmul.msk.f32.vlgmr.msrb.gmra.mxu2 %vm601_vm11, %v2680_v56 }
 0x34b   : > { %2677 = vmatmul.msk.f32.vlgmr.msrb.gmra.mxu0 %vm601_vm11, %v2675_v31 }
 0x34e   : > { %v1941_v60 = vpop.permute.xlu1 %1940 }
 0x34f   : > { %v1956_v28 = vsel %vm375_vm7, %v1955_v35, %v1941_v60  ;;  %v698_v27 = vpop.f32.mrf.mxu3 }
 0x350   : > { %v2200_v6 = vpop.permute.xlu0 %2199  ;;  %2678 = vmatpush.msk.msrb.mxu1 %vm605_vm8, %v1956_v28  ;;  %v678_v23 = vpop.f32.mrf.mxu2  ;;  %v699_v3 = vadd.f32 %v698_v27, %v649_v25 }
 0x351   : > { %v2215_v53 = vsel %vm375_vm7, %v2214_v42, %v2200_v6  ;;  %2679 = vmatmul.msk.f32.vlgmr.msrb.gmra.mxu1 %vm601_vm11, %v2675_v31  ;;  %v679_v9 = vadd.f32 %v678_v23, %v629_v43 }
 0x352   : > { %2683 = vmatpush.msk.msrb.mxu3 %vm605_vm8, %v2215_v53 }
 0x353   : > { %2684 = vmatmul.msk.f32.vlgmr.msrb.gmra.mxu3 %vm601_vm11, %v2680_v56 }
 0x356   : > { %v2407_v32 = vpop.permute.xlu1 %2406 }
 0x357   : > { %v2461_v0 = vsel %vm363_vm1, %v3841_v51, %v2407_v32  ;;  %v2685_v51 = vld [vmem:[%s4037_s1 + $0x40] sm:$0xff] }
 0x358   : > { %v2411_v22 = vpop.permute.xlu0 %2410 }
 0x359   : > { %v2462_v7 = vsel %vm365_vm2, %v2461_v0, %v2411_v22  ;;  %v2539_v22 = vlaneseq }
 0x35a   : > { %v2463_v39 = vsel %vm367_vm3, %v2462_v7, %v2415_v17 }
 0x35e   : > { %v2439_v16 = vpop.permute.xlu1 %2438 }
 0x35f   : > { %v2469_v52 = vsel %vm365_vm2, %v2468_v46, %v2439_v16 }
 0x360   : > { %v2443_v57 = vpop.permute.xlu0 %2442 }
 0x361   : > { %v2470_v50 = vsel %vm367_vm3, %v2469_v52, %v2443_v57 }
 0x362   : > { %v2471_v13 = vsel %vm369_vm4, %v2470_v50, %v2447_v48  ;;  %v2540_v48 = vand.u32 127, %v2539_v22 }
 0x366   : > { %v2419_v47 = vpop.permute.xlu1 %2418 }
 0x367   : > { %v2464_v30 = vsel %vm369_vm4, %v2463_v39, %v2419_v47 }
 0x368   : > { %v2423_v38 = vpop.permute.xlu0 %2422 }
 0x369   : > { %v2465_v1 = vsel %vm371_vm5, %v2464_v30, %v2423_v38  ;;  %v935_v44 = vpop.f32.mrf.mxu0 }
 0x36a   : > { %v2466_v8 = vsel %vm373_vm6, %v2465_v1, %v2427_v49  ;;  %v955_v20 = vpop.f32.mrf.mxu1  ;;  %v958_v11 = vadd.f32 %v935_v44, %v679_v9 }
 0x36b   : > { %v959_v12 = vadd.f32 %v955_v20, %v699_v3 }
 0x36c   : > { %v1223_v19 = vpop.f32.mrf.mxu3  ;;  %v1203_v37 = vpop.f32.mrf.mxu2 }
 0x36d   : > { %v1227_v62 = vadd.f32 %v1223_v19, %v959_v12  ;;  %v1226_v45 = vadd.f32 %v1203_v37, %v958_v11 }
 0x36e   : > { %v2451_v34 = vpop.permute.xlu1 %2450 }
 0x36f   : > { %v2472_v61 = vsel %vm371_vm5, %v2471_v13, %v2451_v34 }
 0x370   : > { %v2455_v63 = vpop.permute.xlu0 %2454 }
 0x371   : > { %v2473_v36 = vsel %vm373_vm6, %v2472_v61, %v2455_v63 }
 0x372   : > { %v2474_v40 = vsel %vm375_vm7, %v2473_v36, %v2459_v55 }
 0x373   : > { %2688 = vmatpush.msk.msra.mxu1 %vm605_vm8, %v2474_v40 }
 0x374   : > { %2689 = vmatmul.msk.f32.vlgmr.msra.gmra.mxu1 %vm601_vm11, %v2685_v51 }
 0x376   : > { %v2431_v15 = vpop.permute.xlu1 %2430 }
 0x377   : > { %v2467_v41 = vsel %vm375_vm7, %v2466_v8, %v2431_v15  ;;  %v1462_v56 = vpop.f32.mrf.mxu0 }
 0x378   : > { %2686 = vmatpush.msk.msra.mxu0 %vm605_vm8, %v2467_v41  ;;  %v1485_v10 = vadd.f32 %v1462_v56, %v1226_v45 }
 0x379   : > { %2687 = vmatmul.msk.f32.vlgmr.msra.gmra.mxu0 %vm601_vm11, %v2685_v51 }
 0x380   : > { %v1482_v54 = vpop.f32.mrf.mxu1 }
 0x381   : > { %v1486_v26 = vadd.f32 %v1482_v54, %v1227_v62 }
 0x385   : > { %v1741_v33 = vpop.f32.mrf.mxu3 }
 0x386   : > { %v1745_v24 = vadd.f32 %v1741_v33, %v1486_v26 }
 0x38c   : > { %v1721_v21 = vpop.f32.mrf.mxu2 }
 0x38d   : > { %v1744_v4 = vadd.f32 %v1721_v21, %v1485_v10 }
 0x3c8   : > { %v1985_v14 = vpop.f32.mrf.mxu0 }
 0x3c9   : > { %v2008_v5 = vadd.f32 %v1985_v14, %v1744_v4 }
 0x3cd   : > { %v2244_v18 = vpop.f32.mrf.mxu2 }
 0x3ce   : > { %v2005_v59 = vpop.f32.mrf.mxu1  ;;  %v2267_v60 = vadd.f32 %v2244_v18, %v2008_v5 }
 0x3cf   : > { %v2009_v58 = vadd.f32 %v2005_v59, %v1745_v24 }
 0x3d6   : > { %v2264_v31 = vpop.f32.mrf.mxu3 }
 0x3d7   : > { %v2268_v29 = vadd.f32 %v2264_v31, %v2009_v58 }
 0x3f1   : > { %v2523_v2 = vpop.f32.mrf.mxu1 }
 0x3f2   : > { %v2527_v35 = vadd.f32 %v2523_v2, %v2268_v29 }
 0x3f4   : > { %2529 = vst [vmem:[%s177_s23 + $0x8] sm:$0xff] %v2527_v35  ;;  %v2534_v42 = vmul.f32 %v2527_v35, %v2527_v35 }
 0x3f6   : > { %v2503_v28 = vpop.f32.mrf.mxu0 }
 0x3f7   : > { %v2526_v6 = vadd.f32 %v2503_v28, %v2267_v60 }
 0x3f9   : > { %2528 = vst [vmem:[%s177_s23] sm:$0xff] %v2526_v6  ;;  %v2533_v53 = vmul.f32 %v2526_v6, %v2526_v6  ;;  %v2530_v17 = vadd.f32 %v2527_v35, %v2526_v6 }
 0x3fb   : > { %2531 = vadd.xlane.f32.xlu0 %v2530_v17  ;;  %v2535_v32 = vadd.f32 %v2534_v42, %v2533_v53 }
 0x3fd   : > { %2536 = vadd.xlane.f32.xlu1 %v2535_v32 }
 0x46e   : > { %v2532_v16 = vpop.xlane.xlu0 %2531 }
 0x46f   : > { %v2541_v47 = vperm.slane %v2532_v16, %v2540_v48 }
 0x470   : > { %v2537_v57 = vpop.xlane.xlu1 %2536 }
 0x471   : > { %v2544_v46 = vperm.slane %v2537_v57, %v2540_v48 }
 0x473   : > { %v2547_v49 = vsel %vm2546_vm12, %v2541_v47, %v2544_v46 }
 0x474   : > { %2550 = vst.msk [vmem:[%s181_s27] sm:$0x3] %vm2549_vm13, %v2547_v49 }
 0x475 PF: > { %s14_s12 = sadd.s32 1, %s2727_s12  }
 0x476   : > { %p11_p4 = scmp.ge.s32.totalorder %s14_s12, 4  }
 0x478   :  { %13 = sbr.rel (!%p11_p4) target bundleno = 1 (0x1), region = 78 }

</bundles_post_ra>
